<compile_context>
chip_gen: v7x
topology: tpu7x:2x2x1
jax: 0.10.0
libtpu: 0.0.40
codegen_flags: <defaults>
</compile_context>

<pallas_src>
import functools
import math

import jax
import jax.numpy as jnp
from jax.experimental import pallas as pl
from jax.experimental.pallas import tpu as pltpu


# ----------------------------------------------------------------------------
# Fused kernel: one (batch b, layer l) grid step.
# ----------------------------------------------------------------------------
def _fused_transformer_kernel(
    x_ref, inw_ref, inb_ref,
    anw_ref, qw_ref, kw_ref, vw_ref, ow_ref,
    fnw_ref, w1_ref, w3_ref, w2_ref,
    outw_ref, outb_ref,
    o_ref,
    act_ref,
    *, num_heads, num_kv_heads, head_dim, eps):
  l = pl.program_id(1)
  num_layers = pl.num_programs(1)

  S, D = act_ref.shape
  rep = num_heads // num_kv_heads
  scale = 1.0 / math.sqrt(head_dim)
  bf16 = jnp.bfloat16

  # ----- layer 0: fused input projection (Linear + bias), kept in VMEM -----
  @pl.when(l == 0)
  def _input_proj():
    xb = x_ref[0].astype(bf16)                               # (S, Din)
    act_ref[...] = (
        jnp.dot(xb, inw_ref[...], preferred_element_type=jnp.float32)
        + inb_ref[...])

  x = act_ref[...]                                           # (S, D) f32

  # ----- attention pre-norm (RMSNorm, f32) -----
  h = x * jax.lax.rsqrt(jnp.mean(x * x, axis=-1, keepdims=True) + eps)
  h = h * anw_ref[0]                                         # (S, D)
  hb = h.astype(bf16)

  # ----- GQA projections: head-batched rank-3 matmuls (bf16 MXU, f32 acc) ---
  hq = jnp.broadcast_to(hb, (num_heads, S, D))
  hkv = jnp.broadcast_to(hb, (num_kv_heads, S, D))
  q = jnp.einsum('hsd,hdf->hsf', hq, qw_ref[0],
                 preferred_element_type=jnp.float32)         # (nh, S, hd)
  k = jnp.einsum('hsd,hdf->hsf', hkv, kw_ref[0],
                 preferred_element_type=jnp.float32)         # (nkv, S, hd)
  v = jnp.einsum('hsd,hdf->hsf', hkv, vw_ref[0],
                 preferred_element_type=jnp.float32)         # (nkv, S, hd)

  # Share each kv head across `rep` query heads via leading-dim broadcast only
  # (equivalent to torch repeat_interleave on the head axis; no lane relayout).
  kb = k.astype(bf16).reshape(num_kv_heads, 1, S, head_dim)
  kb = jnp.broadcast_to(kb, (num_kv_heads, rep, S, head_dim))
  kb = kb.reshape(num_heads, S, head_dim)
  vb = v.astype(bf16).reshape(num_kv_heads, 1, S, head_dim)
  vb = jnp.broadcast_to(vb, (num_kv_heads, rep, S, head_dim))
  vb = vb.reshape(num_heads, S, head_dim)
  qb = q.astype(bf16)

  # ----- attention scores + softmax (f32, head-batched) -----
  s = jnp.einsum('hqd,hkd->hqk', qb, kb,
                 preferred_element_type=jnp.float32) * scale  # (nh, S, S)
  s = s - jnp.max(s, axis=-1, keepdims=True)
  p = jnp.exp(s)
  p = p * pl.reciprocal(jnp.sum(p, axis=-1, keepdims=True), approx=True)

  o = jnp.einsum('hqk,hkd->hqd', p.astype(bf16), vb,
                 preferred_element_type=jnp.float32)          # (nh, S, hd)

  # ----- o_proj: per-head matmul, then reduce over the leading head axis ----
  attn_h = jnp.einsum('hsd,hdf->hsf', o.astype(bf16), ow_ref[0],
                      preferred_element_type=jnp.float32)     # (nh, S, D)
  attn = attn_h[0]
  for i in range(1, num_heads):                               # leading-dim adds
    attn = attn + attn_h[i]

  h1 = x + attn                                               # residual 1

  # ----- FFN pre-norm; torch adds the *normed* value as residual 2 ---------
  h2 = h1 * jax.lax.rsqrt(jnp.mean(h1 * h1, axis=-1, keepdims=True) + eps)
  h2 = h2 * fnw_ref[0]
  gb = h2.astype(bf16)

  a1 = jnp.dot(gb, w1_ref[0], preferred_element_type=jnp.float32)  # (S, Fh)
  a3 = jnp.dot(gb, w3_ref[0], preferred_element_type=jnp.float32)  # (S, Fh)
  ff_in = (a1 * jax.nn.sigmoid(a1)) * a3                      # silu(w1 x) * w3 x
  ff = jnp.dot(ff_in.astype(bf16), w2_ref[0],
               preferred_element_type=jnp.float32)            # (S, D)

  y = h2 + ff                                                 # residual 2
  act_ref[...] = y

  # ----- last layer: fused output projection (Linear + bias), single store --
  @pl.when(l == num_layers - 1)
  def _output_proj():
    out = (jnp.dot(y.astype(bf16), outw_ref[...],
                   preferred_element_type=jnp.float32) + outb_ref[...])
    o_ref[0] = out.astype(o_ref.dtype)


# ----------------------------------------------------------------------------
# Wrapper: weight layout plumbing (trace-time) + pallas_call.
# ----------------------------------------------------------------------------
def transformer_forward(x, in_w, in_b, layers, out_w, out_b, *,
                        num_heads, num_kv_heads, head_dim, eps=1e-6):
  B, S, Din = x.shape
  D = in_w.shape[1]
  Dout = out_w.shape[1]
  L = len(layers)
  Fh = layers[0]['w1'].shape[1]
  nh, g, hd = num_heads, num_kv_heads, head_dim
  bf16 = jnp.bfloat16

  def headify(w, n):            # (D, n*hd) -> (n, D, hd), head-major
    return jnp.transpose(w.reshape(w.shape[0], n, hd), (1, 0, 2))

  # Stack per-layer weights along a leading layer axis; matmul weights in bf16.
  anw = jnp.stack([p['attn_norm'] for p in layers]).reshape(L, 1, D)
  fnw = jnp.stack([p['ffn_norm'] for p in layers]).reshape(L, 1, D)
  qw = jnp.stack([headify(p['wq'], nh) for p in layers]).astype(bf16)   # (L,nh,D,hd)
  kw = jnp.stack([headify(p['wk'], g) for p in layers]).astype(bf16)    # (L,g,D,hd)
  vw = jnp.stack([headify(p['wv'], g) for p in layers]).astype(bf16)    # (L,g,D,hd)
  ow = jnp.stack([p['wo'].reshape(nh, hd, D) for p in layers]).astype(bf16)
  w1 = jnp.stack([p['w1'] for p in layers]).astype(bf16)                # (L,D,Fh)
  w3 = jnp.stack([p['w3'] for p in layers]).astype(bf16)                # (L,D,Fh)
  w2 = jnp.stack([p['w2'] for p in layers]).astype(bf16)                # (L,Fh,D)

  kern = functools.partial(
      _fused_transformer_kernel, num_heads=nh, num_kv_heads=g, head_dim=hd,
      eps=eps)

  return pl.pallas_call(
      kern,
      out_shape=jax.ShapeDtypeStruct((B, S, Dout), x.dtype),
      grid_spec=pltpu.PrefetchScalarGridSpec(
          num_scalar_prefetch=0,
          grid=(B, L),
          in_specs=[
              pl.BlockSpec((1, S, Din), lambda b, l: (b, 0, 0)),         # x
              pl.BlockSpec((Din, D), lambda b, l: (0, 0)),               # in_w
              pl.BlockSpec((1, D), lambda b, l: (0, 0)),                 # in_b
              pl.BlockSpec((1, 1, D), lambda b, l: (l, 0, 0)),           # attn_norm
              pl.BlockSpec((1, nh, D, hd), lambda b, l: (l, 0, 0, 0)),   # q_proj
              pl.BlockSpec((1, g, D, hd), lambda b, l: (l, 0, 0, 0)),    # k_proj
              pl.BlockSpec((1, g, D, hd), lambda b, l: (l, 0, 0, 0)),    # v_proj
              pl.BlockSpec((1, nh, hd, D), lambda b, l: (l, 0, 0, 0)),   # o_proj
              pl.BlockSpec((1, 1, D), lambda b, l: (l, 0, 0)),           # ffn_norm
              pl.BlockSpec((1, D, Fh), lambda b, l: (l, 0, 0)),          # ffn.w1
              pl.BlockSpec((1, D, Fh), lambda b, l: (l, 0, 0)),          # ffn.w3
              pl.BlockSpec((1, Fh, D), lambda b, l: (l, 0, 0)),          # ffn.w2
              pl.BlockSpec((D, Dout), lambda b, l: (0, 0)),              # out_w
              pl.BlockSpec((1, Dout), lambda b, l: (0, 0)),              # out_b
          ],
          out_specs=pl.BlockSpec((1, S, Dout), lambda b, l: (b, 0, 0)),
          scratch_shapes=[pltpu.VMEM((S, D), jnp.float32)]),
      compiler_params=pltpu.CompilerParams(
          dimension_semantics=("parallel", "arbitrary")),
  )(x, in_w.astype(bf16), in_b.reshape(1, D),
    anw, qw, kw, vw, ow, fnw, w1, w3, w2,
    out_w.astype(bf16), out_b.reshape(1, Dout))


# ----------------------------------------------------------------------------
# Pure-JAX reference (f32 math; matmul weights bf16-roundtripped to match the
# kernel's weight storage precision).
# ----------------------------------------------------------------------------
def _rms(z, w, eps):
  return z * jax.lax.rsqrt(jnp.mean(z * z, axis=-1, keepdims=True) + eps) * w


def ref_forward(x, in_w, in_b, layers, out_w, out_b, *,
                num_heads, num_kv_heads, head_dim, eps=1e-6):
  q16 = lambda w: w.astype(jnp.bfloat16).astype(jnp.float32)
  rep = num_heads // num_kv_heads
  B, S, _ = x.shape
  x = x @ q16(in_w) + in_b
  for p in layers:
    h = _rms(x, p['attn_norm'], eps)
    q = (h @ q16(p['wq'])).reshape(B, S, num_heads, head_dim).transpose(0, 2, 1, 3)
    k = (h @ q16(p['wk'])).reshape(B, S, num_kv_heads, head_dim).transpose(0, 2, 1, 3)
    v = (h @ q16(p['wv'])).reshape(B, S, num_kv_heads, head_dim).transpose(0, 2, 1, 3)
    k = jnp.repeat(k, rep, axis=1)
    v = jnp.repeat(v, rep, axis=1)
    s = jnp.einsum('bhqd,bhkd->bhqk', q, k) / math.sqrt(head_dim)
    pr = jax.nn.softmax(s, axis=-1)
    o = jnp.einsum('bhqk,bhkd->bhqd', pr, v)
    o = o.transpose(0, 2, 1, 3).reshape(B, S, num_heads * head_dim) @ q16(p['wo'])
    h1 = x + o
    h2 = _rms(h1, p['ffn_norm'], eps)
    ff = (jax.nn.silu(h2 @ q16(p['w1'])) * (h2 @ q16(p['w3']))) @ q16(p['w2'])
    x = h2 + ff                                   # residual uses the *normed* value
  return x @ q16(out_w) + out_b


# ----------------------------------------------------------------------------
# Main
# ----------------------------------------------------------------------------
if __name__ == "__main__":
  B, S = 2, 16
  DIN, DOUT = 64, 64
  D = 128                          # transformer / attention hidden size
  NUM_HEADS, NUM_KV_HEADS = 4, 2
  HEAD_DIM = D // NUM_HEADS        # 32
  KV_DIM = HEAD_DIM * NUM_KV_HEADS # 64
  FH = 256                         # FFN hidden size
  NUM_LAYERS = 3
  EPS = 1e-6

  key = jax.random.PRNGKey(0)
  keys = iter(jax.random.split(key, 64))

  def rnd(shape, scale=0.05):
    return scale * jax.random.normal(next(keys), shape, dtype=jnp.float32)

  in_w, in_b = rnd((DIN, D)), rnd((D,))
  out_w, out_b = rnd((D, DOUT)), rnd((DOUT,))

  layers = []
  for _ in range(NUM_LAYERS):
    layers.append(dict(
        attn_norm=1.0 + rnd((D,), 0.1),
        wq=rnd((D, D)),
        wk=rnd((D, KV_DIM)),
        wv=rnd((D, KV_DIM)),
        wo=rnd((D, D)),
        ffn_norm=1.0 + rnd((D,), 0.1),
        w1=rnd((D, FH)),
        w3=rnd((D, FH)),
        w2=rnd((FH, D)),
    ))

  x = jax.random.normal(next(keys), (B, S, DIN), dtype=jnp.float32)

  out = transformer_forward(
      x, in_w, in_b, layers, out_w, out_b,
      num_heads=NUM_HEADS, num_kv_heads=NUM_KV_HEADS, head_dim=HEAD_DIM,
      eps=EPS)
  out = jax.block_until_ready(out)

  ref = ref_forward(
      x, in_w, in_b, layers, out_w, out_b,
      num_heads=NUM_HEADS, num_kv_heads=NUM_KV_HEADS, head_dim=HEAD_DIM,
      eps=EPS)

  assert out.shape == (B, S, DOUT), out.shape
  max_err = float(jnp.max(jnp.abs(out - ref)))
  assert max_err < 3e-2, f"max abs error {max_err}"
  print("KERNEL_OK")
</pallas_src>

<mosaic_0001>
module attributes {stable_mosaic.version = 11 : i64} {
  func.func @_fused_transformer_kernel(%arg0: i32, %arg1: i32, %arg2: memref<1x16x64xf32, #tpu.memory_space<vmem>>, %arg3: memref<64x128xbf16, #tpu.memory_space<vmem>>, %arg4: memref<1x128xf32, #tpu.memory_space<vmem>>, %arg5: memref<1x1x128xf32, #tpu.memory_space<vmem>>, %arg6: memref<1x4x128x32xbf16, #tpu.memory_space<vmem>>, %arg7: memref<1x2x128x32xbf16, #tpu.memory_space<vmem>>, %arg8: memref<1x2x128x32xbf16, #tpu.memory_space<vmem>>, %arg9: memref<1x4x32x128xbf16, #tpu.memory_space<vmem>>, %arg10: memref<1x1x128xf32, #tpu.memory_space<vmem>>, %arg11: memref<1x128x256xbf16, #tpu.memory_space<vmem>>, %arg12: memref<1x128x256xbf16, #tpu.memory_space<vmem>>, %arg13: memref<1x256x128xbf16, #tpu.memory_space<vmem>>, %arg14: memref<128x64xbf16, #tpu.memory_space<vmem>>, %arg15: memref<1x64xf32, #tpu.memory_space<vmem>>, %arg16: memref<1x16x64xf32, #tpu.memory_space<vmem>>, %arg17: memref<16x128xf32, #tpu.memory_space<vmem>>) attributes {dimension_semantics = [#tpu.dimension_semantics<parallel>, #tpu.dimension_semantics<arbitrary>], iteration_bounds = array<i64: 2, 3>, scalar_prefetch = 0 : i64, scratch_operands = 1 : i64, tpu.core_type = #tpu.core_type<tc>, window_params = [{transform_indices = @transform_0, window_bounds = array<i64: 1, 16, 64>}, {pipeline_mode = #tpu.pipeline_mode<synchronous>, transform_indices = @transform_1, window_bounds = array<i64: 64, 128>}, {pipeline_mode = #tpu.pipeline_mode<synchronous>, transform_indices = @transform_2, window_bounds = array<i64: 1, 128>}, {transform_indices = @transform_3, window_bounds = array<i64: 1, 1, 128>}, {transform_indices = @transform_4, window_bounds = array<i64: 1, 4, 128, 32>}, {transform_indices = @transform_5, window_bounds = array<i64: 1, 2, 128, 32>}, {transform_indices = @transform_6, window_bounds = array<i64: 1, 2, 128, 32>}, {transform_indices = @transform_7, window_bounds = array<i64: 1, 4, 32, 128>}, {transform_indices = @transform_8, window_bounds = array<i64: 1, 1, 128>}, {transform_indices = @transform_9, window_bounds = array<i64: 1, 128, 256>}, {transform_indices = @transform_10, window_bounds = array<i64: 1, 128, 256>}, {transform_indices = @transform_11, window_bounds = array<i64: 1, 256, 128>}, {pipeline_mode = #tpu.pipeline_mode<synchronous>, transform_indices = @transform_12, window_bounds = array<i64: 128, 64>}, {pipeline_mode = #tpu.pipeline_mode<synchronous>, transform_indices = @transform_13, window_bounds = array<i64: 1, 64>}, {transform_indices = @transform_14, window_bounds = array<i64: 1, 16, 64>}]} {
    %c0_i32 = arith.constant 0 : i32
    %0 = arith.cmpi eq, %arg1, %c0_i32 : i32
    %1 = arith.extui %0 : i1 to i32
    %c0_i32_0 = arith.constant 0 : i32
    %2 = arith.cmpi ne, %1, %c0_i32_0 : i32
    scf.if %2 {
      %c0_54 = arith.constant 0 : index
      %c0_55 = arith.constant 0 : index
      %c0_56 = arith.constant 0 : index
      %111 = vector.load %arg2[%c0_54, %c0_55, %c0_56] : memref<1x16x64xf32, #tpu.memory_space<vmem>>, vector<1x16x64xf32>
      %112 = vector.shape_cast %111 : vector<1x16x64xf32> to vector<16x64xf32>
      %113 = arith.truncf %112 : vector<16x64xf32> to vector<16x64xbf16>
      %c0_57 = arith.constant 0 : index
      %c0_58 = arith.constant 0 : index
      %114 = vector.load %arg3[%c0_57, %c0_58] : memref<64x128xbf16, #tpu.memory_space<vmem>>, vector<64x128xbf16>
      %cst_59 = arith.constant dense<0.000000e+00> : vector<16x128xf32>
      %115 = tpu.matmul %113, %114, %cst_59 {dimension_numbers = #tpu.dot_dimension_numbers<[1], [0], [0], [1], [0, 0, 1, 1], [], []>} : vector<16x64xbf16>, vector<64x128xbf16>, vector<16x128xf32> -> vector<16x128xf32>
      %c0_60 = arith.constant 0 : index
      %c0_61 = arith.constant 0 : index
      %116 = vector.load %arg4[%c0_60, %c0_61] : memref<1x128xf32, #tpu.memory_space<vmem>>, vector<1x128xf32>
      %117 = vector.broadcast %116 : vector<1x128xf32> to vector<16x128xf32>
      %118 = arith.addf %115, %117 : vector<16x128xf32>
      %c0_62 = arith.constant 0 : index
      %c0_63 = arith.constant 0 : index
      %119 = vector.load %arg17[%c0_62, %c0_63] : memref<16x128xf32, #tpu.memory_space<vmem>>, vector<16x128xf32>
      tpu.vector_store %arg17[%c0_62, %c0_63], %118 {strides = array<i32>} : memref<16x128xf32, #tpu.memory_space<vmem>>, vector<16x128xf32>,
    } else {
    }
    %c0 = arith.constant 0 : index
    %c0_1 = arith.constant 0 : index
    %3 = vector.load %arg17[%c0, %c0_1] : memref<16x128xf32, #tpu.memory_space<vmem>>, vector<16x128xf32>
    %4 = arith.mulf %3, %3 : vector<16x128xf32>
    %cst = arith.constant dense<0.000000e+00> : vector<16xf32>
    %5 = vector.multi_reduction <add>, %4, %cst [1] : vector<16x128xf32> to vector<16xf32>
    %6 = vector.shape_cast %5 : vector<16xf32> to vector<16x1xf32>
    %cst_2 = arith.constant 1.280000e+02 : f32
    %7 = vector.broadcast %cst_2 : f32 to vector<16x1xf32>
    %8 = arith.divf %6, %7 : vector<16x1xf32>
    %cst_3 = arith.constant 9.99999997E-7 : f32
    %9 = vector.broadcast %cst_3 : f32 to vector<16x1xf32>
    %10 = arith.addf %8, %9 : vector<16x1xf32>
    %11 = math.rsqrt %10 : vector<16x1xf32>
    %12 = vector.broadcast %11 : vector<16x1xf32> to vector<16x128xf32>
    %13 = arith.mulf %3, %12 : vector<16x128xf32>
    %c0_4 = arith.constant 0 : index
    %c0_5 = arith.constant 0 : index
    %c0_6 = arith.constant 0 : index
    %14 = vector.load %arg5[%c0_4, %c0_5, %c0_6] : memref<1x1x128xf32, #tpu.memory_space<vmem>>, vector<1x1x128xf32>
    %15 = vector.shape_cast %14 : vector<1x1x128xf32> to vector<1x128xf32>
    %16 = vector.broadcast %15 : vector<1x128xf32> to vector<16x128xf32>
    %17 = arith.mulf %13, %16 : vector<16x128xf32>
    %18 = arith.truncf %17 : vector<16x128xf32> to vector<16x128xbf16>
    %19 = vector.shape_cast %18 : vector<16x128xbf16> to vector<1x16x128xbf16>
    %20 = vector.broadcast %19 : vector<1x16x128xbf16> to vector<4x16x128xbf16>
    %21 = vector.shape_cast %18 : vector<16x128xbf16> to vector<1x16x128xbf16>
    %22 = vector.broadcast %21 : vector<1x16x128xbf16> to vector<2x16x128xbf16>
    %c0_7 = arith.constant 0 : index
    %c0_8 = arith.constant 0 : index
    %c0_9 = arith.constant 0 : index
    %c0_10 = arith.constant 0 : index
    %23 = vector.load %arg6[%c0_7, %c0_8, %c0_9, %c0_10] : memref<1x4x128x32xbf16, #tpu.memory_space<vmem>>, vector<1x4x128x32xbf16>
    %24 = vector.shape_cast %23 : vector<1x4x128x32xbf16> to vector<4x128x32xbf16>
    "tpu.trace_start"() <{level = 10 : i32, message = "hsd,hdf->hsf"}> : () -> ()
    %cst_11 = arith.constant dense<0.000000e+00> : vector<4x16x32xf32>
    %25 = tpu.matmul %20, %24, %cst_11 {dimension_numbers = #tpu.dot_dimension_numbers<[2], [1], [1], [2], [0, 0, 0, 1, 1, 2], [0], [0]>} : vector<4x16x128xbf16>, vector<4x128x32xbf16>, vector<4x16x32xf32> -> vector<4x16x32xf32>
    "tpu.trace_stop"() : () -> ()
    %c0_12 = arith.constant 0 : index
    %c0_13 = arith.constant 0 : index
    %c0_14 = arith.constant 0 : index
    %c0_15 = arith.constant 0 : index
    %26 = vector.load %arg7[%c0_12, %c0_13, %c0_14, %c0_15] : memref<1x2x128x32xbf16, #tpu.memory_space<vmem>>, vector<1x2x128x32xbf16>
    %27 = vector.shape_cast %26 : vector<1x2x128x32xbf16> to vector<2x128x32xbf16>
    "tpu.trace_start"() <{level = 10 : i32, message = "hsd,hdf->hsf"}> : () -> ()
    %cst_16 = arith.constant dense<0.000000e+00> : vector<2x16x32xf32>
    %28 = tpu.matmul %22, %27, %cst_16 {dimension_numbers = #tpu.dot_dimension_numbers<[2], [1], [1], [2], [0, 0, 0, 1, 1, 2], [0], [0]>} : vector<2x16x128xbf16>, vector<2x128x32xbf16>, vector<2x16x32xf32> -> vector<2x16x32xf32>
    "tpu.trace_stop"() : () -> ()
    %c0_17 = arith.constant 0 : index
    %c0_18 = arith.constant 0 : index
    %c0_19 = arith.constant 0 : index
    %c0_20 = arith.constant 0 : index
    %29 = vector.load %arg8[%c0_17, %c0_18, %c0_19, %c0_20] : memref<1x2x128x32xbf16, #tpu.memory_space<vmem>>, vector<1x2x128x32xbf16>
    %30 = vector.shape_cast %29 : vector<1x2x128x32xbf16> to vector<2x128x32xbf16>
    "tpu.trace_start"() <{level = 10 : i32, message = "hsd,hdf->hsf"}> : () -> ()
    %cst_21 = arith.constant dense<0.000000e+00> : vector<2x16x32xf32>
    %31 = tpu.matmul %22, %30, %cst_21 {dimension_numbers = #tpu.dot_dimension_numbers<[2], [1], [1], [2], [0, 0, 0, 1, 1, 2], [0], [0]>} : vector<2x16x128xbf16>, vector<2x128x32xbf16>, vector<2x16x32xf32> -> vector<2x16x32xf32>
    "tpu.trace_stop"() : () -> ()
    %32 = arith.truncf %28 : vector<2x16x32xf32> to vector<2x16x32xbf16>
    %33 = vector.shape_cast %32 : vector<2x16x32xbf16> to vector<2x1x16x32xbf16>
    %34 = vector.shape_cast %33 : vector<2x1x16x32xbf16> to vector<2x1x16x32xbf16>
    %35 = vector.broadcast %34 : vector<2x1x16x32xbf16> to vector<2x2x16x32xbf16>
    %36 = vector.shape_cast %35 : vector<2x2x16x32xbf16> to vector<4x16x32xbf16>
    %37 = arith.truncf %31 : vector<2x16x32xf32> to vector<2x16x32xbf16>
    %38 = vector.shape_cast %37 : vector<2x16x32xbf16> to vector<2x1x16x32xbf16>
    %39 = vector.shape_cast %38 : vector<2x1x16x32xbf16> to vector<2x1x16x32xbf16>
    %40 = vector.broadcast %39 : vector<2x1x16x32xbf16> to vector<2x2x16x32xbf16>
    %41 = vector.shape_cast %40 : vector<2x2x16x32xbf16> to vector<4x16x32xbf16>
    %42 = arith.truncf %25 : vector<4x16x32xf32> to vector<4x16x32xbf16>
    "tpu.trace_start"() <{level = 10 : i32, message = "hqd,hkd->hqk"}> : () -> ()
    %cst_22 = arith.constant dense<0.000000e+00> : vector<4x16x16xf32>
    %43 = tpu.matmul %42, %36, %cst_22 {dimension_numbers = #tpu.dot_dimension_numbers<[2], [2], [1], [1], [0, 0, 0, 1, 1, 1], [0], [0]>} : vector<4x16x32xbf16>, vector<4x16x32xbf16>, vector<4x16x16xf32> -> vector<4x16x16xf32>
    "tpu.trace_stop"() : () -> ()
    %cst_23 = arith.constant 0.176776692 : f32
    %44 = vector.broadcast %cst_23 : f32 to vector<4x16x16xf32>
    %45 = arith.mulf %43, %44 : vector<4x16x16xf32>
    %cst_24 = arith.constant dense<0xFF800000> : vector<4x16xf32>
    %46 = vector.multi_reduction <maximumf>, %45, %cst_24 [2] : vector<4x16x16xf32> to vector<4x16xf32>
    %47 = vector.shape_cast %46 : vector<4x16xf32> to vector<4x16x1xf32>
    %48 = vector.broadcast %47 : vector<4x16x1xf32> to vector<4x16x16xf32>
    %49 = arith.subf %45, %48 : vector<4x16x16xf32>
    %50 = math.exp %49 : vector<4x16x16xf32>
    %cst_25 = arith.constant dense<0.000000e+00> : vector<4x16xf32>
    %51 = vector.multi_reduction <add>, %50, %cst_25 [2] : vector<4x16x16xf32> to vector<4x16xf32>
    %52 = vector.shape_cast %51 : vector<4x16xf32> to vector<4x16x1xf32>
    %53 = tpu.reciprocal %52 {approx = true} : vector<4x16x1xf32> -> vector<4x16x1xf32>
    %54 = vector.broadcast %53 : vector<4x16x1xf32> to vector<4x16x16xf32>
    %55 = arith.mulf %50, %54 : vector<4x16x16xf32>
    %56 = arith.truncf %55 : vector<4x16x16xf32> to vector<4x16x16xbf16>
    "tpu.trace_start"() <{level = 10 : i32, message = "hqk,hkd->hqd"}> : () -> ()
    %cst_26 = arith.constant dense<0.000000e+00> : vector<4x16x32xf32>
    %57 = tpu.matmul %56, %41, %cst_26 {dimension_numbers = #tpu.dot_dimension_numbers<[2], [1], [1], [2], [0, 0, 0, 1, 1, 2], [0], [0]>} : vector<4x16x16xbf16>, vector<4x16x32xbf16>, vector<4x16x32xf32> -> vector<4x16x32xf32>
    "tpu.trace_stop"() : () -> ()
    %58 = arith.truncf %57 : vector<4x16x32xf32> to vector<4x16x32xbf16>
    %c0_27 = arith.constant 0 : index
    %c0_28 = arith.constant 0 : index
    %c0_29 = arith.constant 0 : index
    %c0_30 = arith.constant 0 : index
    %59 = vector.load %arg9[%c0_27, %c0_28, %c0_29, %c0_30] : memref<1x4x32x128xbf16, #tpu.memory_space<vmem>>, vector<1x4x32x128xbf16>
    %60 = vector.shape_cast %59 : vector<1x4x32x128xbf16> to vector<4x32x128xbf16>
    "tpu.trace_start"() <{level = 10 : i32, message = "hsd,hdf->hsf"}> : () -> ()
    %cst_31 = arith.constant dense<0.000000e+00> : vector<4x16x128xf32>
    %61 = tpu.matmul %58, %60, %cst_31 {dimension_numbers = #tpu.dot_dimension_numbers<[2], [1], [1], [2], [0, 0, 0, 1, 1, 2], [0], [0]>} : vector<4x16x32xbf16>, vector<4x32x128xbf16>, vector<4x16x128xf32> -> vector<4x16x128xf32>
    "tpu.trace_stop"() : () -> ()
    %62 = vector.extract_strided_slice %61 {offsets = [0, 0, 0], sizes = [1, 16, 128], strides = [1, 1, 1]} : vector<4x16x128xf32> to vector<1x16x128xf32>
    %63 = vector.shape_cast %62 : vector<1x16x128xf32> to vector<16x128xf32>
    %64 = vector.extract_strided_slice %61 {offsets = [1, 0, 0], sizes = [1, 16, 128], strides = [1, 1, 1]} : vector<4x16x128xf32> to vector<1x16x128xf32>
    %65 = vector.shape_cast %64 : vector<1x16x128xf32> to vector<16x128xf32>
    %66 = arith.addf %63, %65 : vector<16x128xf32>
    %67 = vector.extract_strided_slice %61 {offsets = [2, 0, 0], sizes = [1, 16, 128], strides = [1, 1, 1]} : vector<4x16x128xf32> to vector<1x16x128xf32>
    %68 = vector.shape_cast %67 : vector<1x16x128xf32> to vector<16x128xf32>
    %69 = arith.addf %66, %68 : vector<16x128xf32>
    %70 = vector.extract_strided_slice %61 {offsets = [3, 0, 0], sizes = [1, 16, 128], strides = [1, 1, 1]} : vector<4x16x128xf32> to vector<1x16x128xf32>
    %71 = vector.shape_cast %70 : vector<1x16x128xf32> to vector<16x128xf32>
    %72 = arith.addf %69, %71 : vector<16x128xf32>
    %73 = arith.addf %3, %72 : vector<16x128xf32>
    %74 = arith.mulf %73, %73 : vector<16x128xf32>
    %cst_32 = arith.constant dense<0.000000e+00> : vector<16xf32>
    %75 = vector.multi_reduction <add>, %74, %cst_32 [1] : vector<16x128xf32> to vector<16xf32>
    %76 = vector.shape_cast %75 : vector<16xf32> to vector<16x1xf32>
    %cst_33 = arith.constant 1.280000e+02 : f32
    %77 = vector.broadcast %cst_33 : f32 to vector<16x1xf32>
    %78 = arith.divf %76, %77 : vector<16x1xf32>
    %cst_34 = arith.constant 9.99999997E-7 : f32
    %79 = vector.broadcast %cst_34 : f32 to vector<16x1xf32>
    %80 = arith.addf %78, %79 : vector<16x1xf32>
    %81 = math.rsqrt %80 : vector<16x1xf32>
    %82 = vector.broadcast %81 : vector<16x1xf32> to vector<16x128xf32>
    %83 = arith.mulf %73, %82 : vector<16x128xf32>
    %c0_35 = arith.constant 0 : index
    %c0_36 = arith.constant 0 : index
    %c0_37 = arith.constant 0 : index
    %84 = vector.load %arg10[%c0_35, %c0_36, %c0_37] : memref<1x1x128xf32, #tpu.memory_space<vmem>>, vector<1x1x128xf32>
    %85 = vector.shape_cast %84 : vector<1x1x128xf32> to vector<1x128xf32>
    %86 = vector.broadcast %85 : vector<1x128xf32> to vector<16x128xf32>
    %87 = arith.mulf %83, %86 : vector<16x128xf32>
    %88 = arith.truncf %87 : vector<16x128xf32> to vector<16x128xbf16>
    %c0_38 = arith.constant 0 : index
    %c0_39 = arith.constant 0 : index
    %c0_40 = arith.constant 0 : index
    %89 = vector.load %arg11[%c0_38, %c0_39, %c0_40] : memref<1x128x256xbf16, #tpu.memory_space<vmem>>, vector<1x128x256xbf16>
    %90 = vector.shape_cast %89 : vector<1x128x256xbf16> to vector<128x256xbf16>
    %cst_41 = arith.constant dense<0.000000e+00> : vector<16x256xf32>
    %91 = tpu.matmul %88, %90, %cst_41 {dimension_numbers = #tpu.dot_dimension_numbers<[1], [0], [0], [1], [0, 0, 1, 1], [], []>} : vector<16x128xbf16>, vector<128x256xbf16>, vector<16x256xf32> -> vector<16x256xf32>
    %c0_42 = arith.constant 0 : index
    %c0_43 = arith.constant 0 : index
    %c0_44 = arith.constant 0 : index
    %92 = vector.load %arg12[%c0_42, %c0_43, %c0_44] : memref<1x128x256xbf16, #tpu.memory_space<vmem>>, vector<1x128x256xbf16>
    %93 = vector.shape_cast %92 : vector<1x128x256xbf16> to vector<128x256xbf16>
    %cst_45 = arith.constant dense<0.000000e+00> : vector<16x256xf32>
    %94 = tpu.matmul %88, %93, %cst_45 {dimension_numbers = #tpu.dot_dimension_numbers<[1], [0], [0], [1], [0, 0, 1, 1], [], []>} : vector<16x128xbf16>, vector<128x256xbf16>, vector<16x256xf32> -> vector<16x256xf32>
    %95 = arith.negf %91 : vector<16x256xf32>
    %96 = math.exp %95 : vector<16x256xf32>
    %cst_46 = arith.constant 1.000000e+00 : f32
    %97 = vector.broadcast %cst_46 : f32 to vector<16x256xf32>
    %98 = arith.addf %97, %96 : vector<16x256xf32>
    %99 = arith.divf %97, %98 : vector<16x256xf32>
    %100 = arith.mulf %91, %99 : vector<16x256xf32>
    %101 = arith.mulf %100, %94 : vector<16x256xf32>
    %102 = arith.truncf %101 : vector<16x256xf32> to vector<16x256xbf16>
    %c0_47 = arith.constant 0 : index
    %c0_48 = arith.constant 0 : index
    %c0_49 = arith.constant 0 : index
    %103 = vector.load %arg13[%c0_47, %c0_48, %c0_49] : memref<1x256x128xbf16, #tpu.memory_space<vmem>>, vector<1x256x128xbf16>
    %104 = vector.shape_cast %103 : vector<1x256x128xbf16> to vector<256x128xbf16>
    %cst_50 = arith.constant dense<0.000000e+00> : vector<16x128xf32>
    %105 = tpu.matmul %102, %104, %cst_50 {dimension_numbers = #tpu.dot_dimension_numbers<[1], [0], [0], [1], [0, 0, 1, 1], [], []>} : vector<16x256xbf16>, vector<256x128xbf16>, vector<16x128xf32> -> vector<16x128xf32>
    %106 = arith.addf %87, %105 : vector<16x128xf32>
    %c0_51 = arith.constant 0 : index
    %c0_52 = arith.constant 0 : index
    %107 = vector.load %arg17[%c0_51, %c0_52] : memref<16x128xf32, #tpu.memory_space<vmem>>, vector<16x128xf32>
    tpu.vector_store %arg17[%c0_51, %c0_52], %106 {strides = array<i32>} : memref<16x128xf32, #tpu.memory_space<vmem>>, vector<16x128xf32>,
    %c2_i32 = arith.constant 2 : i32
    %108 = arith.cmpi eq, %arg1, %c2_i32 : i32
    %109 = arith.extui %108 : i1 to i32
    %c0_i32_53 = arith.constant 0 : i32
    %110 = arith.cmpi ne, %109, %c0_i32_53 : i32
    scf.if %110 {
      %111 = arith.truncf %106 : vector<16x128xf32> to vector<16x128xbf16>
      %c0_54 = arith.constant 0 : index
      %c0_55 = arith.constant 0 : index
      %112 = vector.load %arg14[%c0_54, %c0_55] : memref<128x64xbf16, #tpu.memory_space<vmem>>, vector<128x64xbf16>
      %cst_56 = arith.constant dense<0.000000e+00> : vector<16x64xf32>
      %113 = tpu.matmul %111, %112, %cst_56 {dimension_numbers = #tpu.dot_dimension_numbers<[1], [0], [0], [1], [0, 0, 1, 1], [], []>} : vector<16x128xbf16>, vector<128x64xbf16>, vector<16x64xf32> -> vector<16x64xf32>
      %c0_57 = arith.constant 0 : index
      %c0_58 = arith.constant 0 : index
      %114 = vector.load %arg15[%c0_57, %c0_58] : memref<1x64xf32, #tpu.memory_space<vmem>>, vector<1x64xf32>
      %115 = vector.broadcast %114 : vector<1x64xf32> to vector<16x64xf32>
      %116 = arith.addf %113, %115 : vector<16x64xf32>
      %c0_59 = arith.constant 0 : index
      %c0_60 = arith.constant 0 : index
      %c0_61 = arith.constant 0 : index
      %117 = vector.load %arg16[%c0_59, %c0_60, %c0_61] : memref<1x16x64xf32, #tpu.memory_space<vmem>>, vector<1x16x64xf32>
      %118 = vector.shape_cast %117 : vector<1x16x64xf32> to vector<16x64xf32>
      %119 = vector.shape_cast %116 : vector<16x64xf32> to vector<1x16x64xf32>
      tpu.vector_store %arg16[%c0_59, %c0_60, %c0_61], %119 {strides = array<i32>} : memref<1x16x64xf32, #tpu.memory_space<vmem>>, vector<1x16x64xf32>,
    } else {
    }
    return
  }
  func.func @transform_0(%arg0: i32, %arg1: i32) -> (i32, i32, i32) {
    %c0_i32 = arith.constant 0 : i32
    %c0_i32_0 = arith.constant 0 : i32
    %c0_i32_1 = arith.constant 0 : i32
    return %arg0, %c0_i32, %c0_i32_0 : i32, i32, i32
  }
  func.func @transform_1(%arg0: i32, %arg1: i32) -> (i32, i32) {
    %c0_i32 = arith.constant 0 : i32
    %c0_i32_0 = arith.constant 0 : i32
    %c0_i32_1 = arith.constant 0 : i32
    return %c0_i32, %c0_i32_0 : i32, i32
  }
  func.func @transform_2(%arg0: i32, %arg1: i32) -> (i32, i32) {
    %c0_i32 = arith.constant 0 : i32
    %c0_i32_0 = arith.constant 0 : i32
    %c0_i32_1 = arith.constant 0 : i32
    return %c0_i32, %c0_i32_0 : i32, i32
  }
  func.func @transform_3(%arg0: i32, %arg1: i32) -> (i32, i32, i32) {
    %c0_i32 = arith.constant 0 : i32
    %c0_i32_0 = arith.constant 0 : i32
    %c0_i32_1 = arith.constant 0 : i32
    return %arg1, %c0_i32, %c0_i32_0 : i32, i32, i32
  }
  func.func @transform_4(%arg0: i32, %arg1: i32) -> (i32, i32, i32, i32) {
    %c0_i32 = arith.constant 0 : i32
    %c0_i32_0 = arith.constant 0 : i32
    %c0_i32_1 = arith.constant 0 : i32
    %c0_i32_2 = arith.constant 0 : i32
    return %arg1, %c0_i32, %c0_i32_0, %c0_i32_1 : i32, i32, i32, i32
  }
  func.func @transform_5(%arg0: i32, %arg1: i32) -> (i32, i32, i32, i32) {
    %c0_i32 = arith.constant 0 : i32
    %c0_i32_0 = arith.constant 0 : i32
    %c0_i32_1 = arith.constant 0 : i32
    %c0_i32_2 = arith.constant 0 : i32
    return %arg1, %c0_i32, %c0_i32_0, %c0_i32_1 : i32, i32, i32, i32
  }
  func.func @transform_6(%arg0: i32, %arg1: i32) -> (i32, i32, i32, i32) {
    %c0_i32 = arith.constant 0 : i32
    %c0_i32_0 = arith.constant 0 : i32
    %c0_i32_1 = arith.constant 0 : i32
    %c0_i32_2 = arith.constant 0 : i32
    return %arg1, %c0_i32, %c0_i32_0, %c0_i32_1 : i32, i32, i32, i32
  }
  func.func @transform_7(%arg0: i32, %arg1: i32) -> (i32, i32, i32, i32) {
    %c0_i32 = arith.constant 0 : i32
    %c0_i32_0 = arith.constant 0 : i32
    %c0_i32_1 = arith.constant 0 : i32
    %c0_i32_2 = arith.constant 0 : i32
    return %arg1, %c0_i32, %c0_i32_0, %c0_i32_1 : i32, i32, i32, i32
  }
  func.func @transform_8(%arg0: i32, %arg1: i32) -> (i32, i32, i32) {
    %c0_i32 = arith.constant 0 : i32
    %c0_i32_0 = arith.constant 0 : i32
    %c0_i32_1 = arith.constant 0 : i32
    return %arg1, %c0_i32, %c0_i32_0 : i32, i32, i32
  }
  func.func @transform_9(%arg0: i32, %arg1: i32) -> (i32, i32, i32) {
    %c0_i32 = arith.constant 0 : i32
    %c0_i32_0 = arith.constant 0 : i32
    %c0_i32_1 = arith.constant 0 : i32
    return %arg1, %c0_i32, %c0_i32_0 : i32, i32, i32
  }
  func.func @transform_10(%arg0: i32, %arg1: i32) -> (i32, i32, i32) {
    %c0_i32 = arith.constant 0 : i32
    %c0_i32_0 = arith.constant 0 : i32
    %c0_i32_1 = arith.constant 0 : i32
    return %arg1, %c0_i32, %c0_i32_0 : i32, i32, i32
  }
  func.func @transform_11(%arg0: i32, %arg1: i32) -> (i32, i32, i32) {
    %c0_i32 = arith.constant 0 : i32
    %c0_i32_0 = arith.constant 0 : i32
    %c0_i32_1 = arith.constant 0 : i32
    return %arg1, %c0_i32, %c0_i32_0 : i32, i32, i32
  }
  func.func @transform_12(%arg0: i32, %arg1: i32) -> (i32, i32) {
    %c0_i32 = arith.constant 0 : i32
    %c0_i32_0 = arith.constant 0 : i32
    %c0_i32_1 = arith.constant 0 : i32
    return %c0_i32, %c0_i32_0 : i32, i32
  }
  func.func @transform_13(%arg0: i32, %arg1: i32) -> (i32, i32) {
    %c0_i32 = arith.constant 0 : i32
    %c0_i32_0 = arith.constant 0 : i32
    %c0_i32_1 = arith.constant 0 : i32
    return %c0_i32, %c0_i32_0 : i32, i32
  }
  func.func @transform_14(%arg0: i32, %arg1: i32) -> (i32, i32, i32) {
    %c0_i32 = arith.constant 0 : i32
    %c0_i32_0 = arith.constant 0 : i32
    %c0_i32_1 = arith.constant 0 : i32
    return %arg0, %c0_i32, %c0_i32_0 : i32, i32, i32
  }
}

</mosaic_0001>

<bundles_post_ra>
// kernel: tpu_custom_call.1
= control target key start
LH: loop header
LB: loop body
LE: loop exit
PB: predicated region body
PF: predicated region fallthrough
CT: control target
= control target key end

     0   :  { %s4761_s0 = inlined_call_operand.vmem [shape: f32[2,16,64], index: 0, kind: input, shape index: {}]   ;;  %s4762_s1 = inlined_call_operand.vmem [shape: bf16[64,128], index: 1, kind: input, shape index: {}]   ;;  %s4763_s2 = inlined_call_operand.vmem [shape: f32[1,128], index: 2, kind: input, shape index: {}]   ;;  %s4764_s3 = inlined_call_operand.vmem [shape: f32[3,1,128], index: 3, kind: input, shape index: {}]   ;;  %s4765_s4 = inlined_call_operand.vmem [shape: bf16[3,4,128,32], index: 4, kind: input, shape index: {}]   ;;  %s4766_s5 = inlined_call_operand.vmem [shape: bf16[3,2,128,32], index: 5, kind: input, shape index: {}]   ;;  %s4767_s6 = inlined_call_operand.vmem [shape: bf16[3,2,128,32], index: 6, kind: input, shape index: {}]   ;;  %s4768_s7 = inlined_call_operand.vmem [shape: bf16[3,4,32,128], index: 7, kind: input, shape index: {}]   ;;  %s4769_s8 = inlined_call_operand.vmem [shape: f32[3,1,128], index: 8, kind: input, shape index: {}]   ;;  %s4770_s9 = inlined_call_operand.vmem [shape: bf16[3,128,256], index: 9, kind: input, shape index: {}]   ;;  %s4771_s10 = inlined_call_operand.vmem [shape: bf16[3,128,256], index: 10, kind: input, shape index: {}]   ;;  %s4772_s11 = inlined_call_operand.vmem [shape: bf16[3,256,128], index: 11, kind: input, shape index: {}]   ;;  %s4773_s12 = inlined_call_operand.vmem [shape: bf16[128,64], index: 12, kind: input, shape index: {}]   ;;  %s4774_s13 = inlined_call_operand.vmem [shape: f32[1,64], index: 13, kind: input, shape index: {}]   ;;  %s4775_s14 = inlined_call_operand.hbm [shape: f32[2,16,64], index: 14, kind: output, shape index: {}]  }
   0x1   :  { %4791 = sst [smem:[#allocation18_spill]] %s4761_s0 }
   0x2   :  { %4792 = sst [smem:[#allocation19_spill]] %s4763_s2 }
   0x3   :  { %4793 = sst [smem:[#allocation20_spill]] %s4765_s4 }
   0x4   :  { %4794 = sst [smem:[#allocation21_spill]] %s4766_s5 }
   0x5   :  { %4795 = sst [smem:[#allocation22_spill]] %s4773_s12 }
   0x6   :  { %4796 = sst [smem:[#allocation23_spill]] %s4774_s13 }
   0x7   :  { %4797 = sst [smem:[#allocation24_spill]] %s4775_s14 }
   0x8   :  { %19 = vsyncpa [#allocation4], 0 }
   0x9   :  { %21 = vsyncpa [#allocation4 + $0x1], 0  ;;  %s4211_s29 = smov 0   ;;  %s4213_s30 = smov 0  }
   0xa   :  { %s4215_s15 = smov 0   ;;  %s4217_s16 = smov 0  }
   0xb   :  { %s4219_s17 = smov 0   ;;  %s4221_s18 = smov 0  }
   0xc   :  { %s4223_s19 = smov 0   ;;  %s4225_s20 = smov 0  }
   0xd LB: > { %4798 = sst [smem:[#allocation6_spill]] %s4096_s29  ;;  %s3145_s21 = sadd.s32 4294967295, %s4124_s20   ;;  %s4124_s20 = sphi %s4225_s20, %s27_s20   ;;  %s4120_s19 = sphi %s4223_s19, %s4833_s19   ;;  %s4116_s18 = sphi %s4221_s18, %s4832_s18   ;;  %s4112_s17 = sphi %s4219_s17, %s4831_s17   ;;  %s4108_s16 = sphi %s4217_s16, %s4830_s16   ;;  %s4104_s15 = sphi %s4215_s15, %s4829_s15   ;;  %s4100_s30 = sphi %s4213_s30, %s4828_s30   ;;  %s4096_s29 = sphi %s4211_s29, %s4827_s29  }
   0xe   : > { %4799 = sst [smem:[#allocation7_spill]] %s4100_s30  ;;  %s3146_s22 = sadd.s32 4294967294, %s4124_s20  }
   0xf   : > { %4800 = sst [smem:[#allocation8_spill]] %s4104_s15  ;;  %s36_s23 = sadd.s32 1, %s4116_s18 }
  0x10   : > { %4801 = sst [smem:[#allocation9_spill]] %s4112_s17  ;;  %p37_p0 = scmp.ge.s32.totalorder %s36_s23, 3 }
  0x11   : > { %4802 = sst [smem:[#allocation10_spill]] %s4116_s18  ;;  %s39_s24 = sadd.s32 1, %s4120_s19 }
  0x12   : > { %4803 = sst [smem:[#allocation11_spill]] %s4120_s19  ;;  %p400_p1 = scmp.ne.s32.totalorder %s4104_s15, %s4100_s30 }
  0x13   : > { %4804 = sst [smem:[#allocation12_spill]] %s4124_s20  ;;  %p401_p2 = scmp.eq.s32.totalorder %s3145_s21, 5 }
  0x14   : > { %s4835_s23 = smov (%p37_p0, %s36_s23), 0  ;;  %s4837_s24 = smov (!%p37_p0, %s39_s24), %s4120_s19 }
  0x15   : > { %4805 = sst [smem:[#allocation13_spill]] %s4835_s23  ;;  %p4260_p3 = por %p401_p2, %p400_p1 }
  0x16   : > { %p406_p4 = scmp.ne.s32.totalorder %s4100_s30, %s4096_s29  ;;  %p41_p5 = scmp.ge.s32.totalorder %s4837_s24, 2 }
  0x17   : > { %s4806_s25 = scalar_select %p4260_p3, 1, 0 }
  0x18   : > { %p407_p6 = scmp.eq.s32.totalorder %s3146_s22, 5  ;;  %p3149_p7 = scmp.ge.s32.totalorder %s4124_s20, 1 }
  0x19   : > { %4807 = sst [smem:[#allocation14_spill]] %s4806_s25  ;;  %p513_p8 = scmp.lt.s32.totalorder %s4124_s20, 7 }
  0x1a   : > { %s4839_s24 = smov (%p41_p5, %s4837_s24), 0  ;;  %p4270_p9 = por %p407_p6, %p406_p4 }
  0x1b   : > { %4808 = sst [smem:[#allocation15_spill]] %s4839_s24  ;;  %p514_p10 = pnand %p3149_p7, %p513_p8 }
  0x1c   : > { %s4809_s26 = scalar_select %p4270_p9, 1, 0 }
  0x1d   : > { %s387_s27 = ssub.s32 %s4120_s19, %s4839_s24  ;;  %s390_s28 = sadd.s32 1, %s4104_s15 }
  0x1e   : > { %4810 = sst [smem:[#allocation16_spill]] %s4809_s26  ;;  %p388_p11 = scmp.eq.s32.totalorder %s387_s27, 0 }
  0x1f   : > { %517 = sbr.rel (%p514_p10) target bundleno = 2622 (0xa3e), region = 76  ;;  %s4784_s22 = sand.u32 (!%p514_p10), 1, %s4100_s30  }
  0x20   : > { %s4278_s21 = scalar_select %p388_p11, %s4104_s15, %s390_s28  }
  0x21   : > { %p600_p12 = scmp.lt.s32.totalorder (!%p514_p10), %s4112_s17, 1  ;;  %s3150_s23 = sshll.u32 (!%p514_p10), %s4784_s22, 4 }
  0x22   : > { %4811 = sst [smem:[#allocation17_spill]] %s4278_s21  ;;  %p605_p13 = scmp.lt.s32.totalorder (!%p514_p10), %s4108_s16, 2 }
  0x23   : > { %s4812_s0 = sld [smem:[#allocation18_spill]] (!%p514_p10)  ;;  %s4813_s4 = sld [smem:[#allocation20_spill]] (!%p514_p10) }
  0x24   : > { %s4814_s5 = sld [smem:[#allocation21_spill]] (!%p514_p10)  ;;  %p3167_p0 = scmp.ne.s32.totalorder (!%p514_p10), %s4108_s16, 0 }
  0x26   : > { %s601_s18 = scalar_select %p600_p12, %s4112_s17, 1 }
  0x27   : > { %s4287_s26 = scalar_select %p605_p13, %s4108_s16, 2 }
  0x28   : > { %s3327_s27 = sshll.u32 %s601_s18, 4  ;;  %v3824_v0 = vld [vmem:[%s4762_s1] sm:$0xff] (!%p3167_p0)   ;;  %v4126_v1 = vmov (!%p3167_p0), 0.0   ;;  %v3825_v2 = vld [vmem:[%s4762_s1 + $0x8] sm:$0xff] (!%p3167_p0)   ;;  %vm4127_vm0 = vmmov (!%p3167_p0), 0   ;;  %v3826_v3 = vld [vmem:[%s4762_s1 + $0x10] sm:$0xff] (!%p3167_p0)  }
  0x29   : > { %s604_s19 = scalar_lea.vmem %s4812_s0, %s3327_s27  ;;  %s3328_s20 = sshll.u32 %s4287_s26, 8  ;;  %3472 = vmatprep.subr.bf16.mxu0 (!%p3167_p0), %v4126_v1  ;;  %3480 = vmatprep.mubr.msk.bf16.mxu0 (!%p3167_p0), %vm4127_vm0, %v4126_v1  ;;  %v3827_v4 = vld [vmem:[%s4762_s1 + $0x18] sm:$0xff] (!%p3167_p0)   ;;  %vm693_vm1 = vcmask (!%p3167_p0), 523264  }
  0x2a   : > { %s3329_s22 = sshll.u32 %s4287_s26, 7  ;;  %s4301_s30 = scalar_lea.vmem %s4813_s4, %s3328_s20  ;;  %3473 = vmatpush3.bf16.msra.mxu0 (!%p3167_p0), %v3824_v0  ;;  %v651_v5 = vld [vmem:[%s604_s19] sm:$0xff] (!%p3167_p0)  ;;  %v652_v6 = vld [vmem:[%s604_s19 + $0x8] sm:$0xff] (!%p3167_p0) }
  0x2b   : > { %s4306_s12 = scalar_lea.vmem %s4814_s5, %s3329_s22  ;;  %s4311_s24 = scalar_lea.vmem %s4767_s6, %s3329_s22  ;;  %3474 = vmatprep.subr.bf16.mxu0 (!%p3167_p0), %v4126_v1  ;;  %v653_v7 = vpack.c.bf16 (!%p3167_p0), %v652_v6, %v651_v5 }
  0x2c   : > { %s3331_s27 = sshll.u32 %s4287_s26, 6  ;;  %s630_s20 = scalar_lea.vmem %s4769_s8, %s4287_s26 }
  0x2d   : > { %s4317_s28 = scalar_lea.vmem %s4768_s7, %s3331_s27  ;;  %s4326_s13 = scalar_lea.vmem %s4770_s9, %s3329_s22 }
  0x2e   : > { %s4331_s2 = scalar_lea.vmem %s4771_s10, %s3329_s22  ;;  %s4336_s15 = scalar_lea.vmem %s4772_s11, %s3329_s22  ;;  %3475 = vmatpush3.bf16.msra.mxu0 (!%p3167_p0), %v3825_v2 }
  0x2f   : > { %s4338_s27 = scalar_lea.vmem [#allocation3], %s3150_s23  ;;  %650 = sbr.rel (%p3167_p0) target bundleno = 274 (0x112), region = 80  ;;  %3476 = vmatprep.subr.bf16.mxu0 (!%p3167_p0), %v4126_v1 }
  0x30   : > { %s4815_s18 = sld [smem:[#allocation19_spill]] (!%p3167_p0) }
  0x32   : > { %3477 = vmatpush3.bf16.msra.mxu0 (!%p3167_p0), %v3826_v3 }
  0x33   : > { %3478 = vmatprep.subr.bf16.mxu0 (!%p3167_p0), %v4126_v1 }
  0x36   : > { %3479 = vmatpush3.bf16.msra.mxu0 %v3827_v4  ;;  %v3168_v8 = vld [vmem:[%s4815_s18] ss:$0 sm:$0xff] }
  0x39   : > { %3481 = vmatmul.mubr.msk.bf16.vlgmr.msra.gmra.mrb[0].mxu0 %vm693_vm1, %v653_v7 }
 0x10c   : > { %v731_v9 = vpop.f32.mrb[0].mxu0 }
 0x10d   : > { %v732_v10 = vadd.f32 %v3168_v8, %v731_v9  ;;  %v3482_v11 = vpop.f32.mrb[1].mxu0 }
 0x10e   : > { %v734_v12 = vpop.f32.mrb[2].mxu0 }
 0x10f   : > { %738 = vst [vmem:[#allocation2] sm:$0xff] %v732_v10  ;;  %v735_v13 = vadd.f32 %v3168_v8, %v734_v12  ;;  %v3483_v14 = vpop.f32.mrb[3].mxu0 }
 0x111   : > { %739 = vst [vmem:[#allocation2 + $0x8] sm:$0xff] %v735_v13 }
 0x112 PF: > { %v4128_v18 = vmov 0.0   ;;  %v3828_v19 = vld [vmem:[%s4301_s30] sm:$0xff]   ;;  %v3830_v22 = vld [vmem:[%s4301_s30 + $0x8] sm:$0xff]   ;;  %v3832_v24 = vld [vmem:[%s4301_s30 + $0x10] sm:$0xff]   ;;  %vm4129_vm2 = vmmov 0   ;;  %s4816_s21 = scalar_lea.vmem %s4764_s3, %s4287_s26  ;;  %vm1615_vm3 = vcmask 261120  }
 0x113   : > { %3484 = vmatprep.subr.bf16.mxu0 %v4128_v18  ;;  %3504 = vmatprep.subr.bf16.mxu1 %v4128_v18  ;;  %v3829_v20 = vld [vmem:[%s4301_s30 + $0x40] sm:$0xff]   ;;  %v3831_v23 = vld [vmem:[%s4301_s30 + $0x48] sm:$0xff]   ;;  %v3833_v25 = vld [vmem:[%s4301_s30 + $0x50] sm:$0xff]   ;;  %vm1806_vm4 = vcmask 130048   ;;  %p3312_p1 = scmp.ne.s32.totalorder %s4108_s16, 2 }
 0x114   : > { %3485 = vmatpush3.bf16.msra.mxu0 %v3828_v19  ;;  %3505 = vmatpush3.bf16.msra.mxu1 %v3829_v20  ;;  %v3834_v26 = vld [vmem:[%s4301_s30 + $0x18] sm:$0xff]   ;;  %v3836_v28 = vld [vmem:[%s4301_s30 + $0x20] sm:$0xff]   ;;  %v3838_v30 = vld [vmem:[%s4301_s30 + $0x28] sm:$0xff]   ;;  %vm4132_vm5 = vmmov (!%p3312_p1), 0   ;;  %vm2953_vm6 = vcmask (!%p3312_p1), 523264  }
 0x115   : > { %3486 = vmatprep.subr.bf16.mxu0 %v4128_v18  ;;  %3506 = vmatprep.subr.bf16.mxu1 %v4128_v18  ;;  %v3835_v27 = vld [vmem:[%s4301_s30 + $0x58] sm:$0xff]   ;;  %v3837_v29 = vld [vmem:[%s4301_s30 + $0x60] sm:$0xff]   ;;  %v3839_v31 = vld [vmem:[%s4301_s30 + $0x68] sm:$0xff]  }
 0x116   : > { %v4356_v15 = vld [vmem:[#allocation2] sm:$0xff]  ;;  %v3840_v32 = vld [vmem:[%s4301_s30 + $0x30] sm:$0xff]   ;;  %v3842_v34 = vld [vmem:[%s4301_s30 + $0x38] sm:$0xff]   ;;  %3500 = vmatprep.mubr.msk.bf16.mxu0 %vm4129_vm2, %v4128_v18  ;;  %3520 = vmatprep.mubr.msk.bf16.mxu1 %vm4129_vm2, %v4128_v18 }
 0x117   : > { %v742_v17 = vmul.f32 %v4356_v15, %v4356_v15  ;;  %v3841_v33 = vld [vmem:[%s4301_s30 + $0x70] sm:$0xff]   ;;  %v3843_v35 = vld [vmem:[%s4301_s30 + $0x78] sm:$0xff]   ;;  %v3174_v45 = vld [vmem:[%s4816_s21] ss:$0 sm:$0xff]  ;;  %s4818_s21 = sld [smem:[#allocation23_spill]] (!%p3312_p1) }
 0x118   : > { %v4358_v16 = vld [vmem:[#allocation2 + $0x8] sm:$0xff]  ;;  %3487 = vmatpush3.bf16.msra.mxu0 %v3830_v22  ;;  %3507 = vmatpush3.bf16.msra.mxu1 %v3831_v23  ;;  %v3844_v49 = vld [vmem:[%s4301_s30 + $0x80] sm:$0xff]   ;;  %v3848_v54 = vld [vmem:[%s4301_s30 + $0x90] sm:$0xff]  }
 0x119   : > { %744 = vadd.xlane.f32.xlu0 %v742_v17  ;;  %v743_v21 = vmul.f32 %v4358_v16, %v4358_v16  ;;  %3488 = vmatprep.subr.bf16.mxu0 %v4128_v18  ;;  %v3845_v50 = vld [vmem:[%s4301_s30 + $0xc0] sm:$0xff]   ;;  %v3846_v52 = vld [vmem:[%s4301_s30 + $0x88] sm:$0xff]   ;;  %v3849_v55 = vld [vmem:[%s4301_s30 + $0xd0] sm:$0xff]  }
 0x11a   : > { %3508 = vmatprep.subr.bf16.mxu1 %v4128_v18  ;;  %v3847_v53 = vld [vmem:[%s4301_s30 + $0xc8] sm:$0xff]   ;;  %v3850_v56 = vld [vmem:[%s4301_s30 + $0x98] sm:$0xff]   ;;  %v3852_v58 = vld [vmem:[%s4301_s30 + $0xa0] sm:$0xff]  }
 0x11b   : > { %v3851_v57 = vld [vmem:[%s4301_s30 + $0xd8] sm:$0xff]   ;;  %v3853_v59 = vld [vmem:[%s4301_s30 + $0xe0] sm:$0xff]   ;;  %v3854_v60 = vld [vmem:[%s4301_s30 + $0xa8] sm:$0xff]  }
 0x11c   : > { %3489 = vmatpush3.bf16.msra.mxu0 %v3832_v24  ;;  %3509 = vmatpush3.bf16.msra.mxu1 %v3833_v25  ;;  %v3855_v61 = vld [vmem:[%s4301_s30 + $0xe8] sm:$0xff]   ;;  %v3856_v62 = vld [vmem:[%s4301_s30 + $0xb0] sm:$0xff]   ;;  %v3858_v0 = vld [vmem:[%s4301_s30 + $0xb8] sm:$0xff]  }
 0x11d   : > { %746 = vadd.xlane.f32.xlu0 %v743_v21  ;;  %3490 = vmatprep.subr.bf16.mxu0 %v4128_v18  ;;  %v3857_v63 = vld [vmem:[%s4301_s30 + $0xf0] sm:$0xff]   ;;  %v3859_v1 = vld [vmem:[%s4301_s30 + $0xf8] sm:$0xff]   ;;  %v3860_v2 = vld [vmem:[%s4306_s12] sm:$0xff]  }
 0x11e   : > { %3510 = vmatprep.subr.bf16.mxu1 %v4128_v18  ;;  %v3861_v3 = vld [vmem:[%s4306_s12 + $0x40] sm:$0xff]   ;;  %v3862_v4 = vld [vmem:[%s4306_s12 + $0x8] sm:$0xff]   ;;  %v3864_v6 = vld [vmem:[%s4306_s12 + $0x10] sm:$0xff]  }
 0x11f   : > { %v3863_v5 = vld [vmem:[%s4306_s12 + $0x48] sm:$0xff]   ;;  %v3865_v7 = vld [vmem:[%s4306_s12 + $0x50] sm:$0xff]   ;;  %v3866_v8 = vld [vmem:[%s4306_s12 + $0x18] sm:$0xff]  }
 0x120   : > { %3491 = vmatpush3.bf16.msra.mxu0 %v3834_v26  ;;  %3511 = vmatpush3.bf16.msra.mxu1 %v3835_v27  ;;  %v3867_v9 = vld [vmem:[%s4306_s12 + $0x58] sm:$0xff]   ;;  %v3868_v10 = vld [vmem:[%s4306_s12 + $0x20] sm:$0xff]   ;;  %v3870_v12 = vld [vmem:[%s4306_s12 + $0x28] sm:$0xff]  }
 0x121   : > { %3492 = vmatprep.subr.bf16.mxu0 %v4128_v18  ;;  %3512 = vmatprep.subr.bf16.mxu1 %v4128_v18  ;;  %v3869_v11 = vld [vmem:[%s4306_s12 + $0x60] sm:$0xff]   ;;  %v3871_v13 = vld [vmem:[%s4306_s12 + $0x68] sm:$0xff]   ;;  %v3872_v14 = vld [vmem:[%s4306_s12 + $0x30] sm:$0xff]  }
 0x122   : > { %v3875_v17 = vld [vmem:[%s4306_s12 + $0x78] sm:$0xff]   ;;  %v3876_v19 = vld [vmem:[%s4311_s24] sm:$0xff]   ;;  %v3878_v21 = vld [vmem:[%s4311_s24 + $0x8] sm:$0xff]  }
 0x123   : > { %v3877_v20 = vld [vmem:[%s4311_s24 + $0x40] sm:$0xff]   ;;  %v3879_v22 = vld [vmem:[%s4311_s24 + $0x48] sm:$0xff]   ;;  %v3880_v23 = vld [vmem:[%s4311_s24 + $0x10] sm:$0xff]  }
 0x124   : > { %3493 = vmatpush3.bf16.msra.mxu0 %v3836_v28  ;;  %3513 = vmatpush3.bf16.msra.mxu1 %v3837_v29  ;;  %v3881_v24 = vld [vmem:[%s4311_s24 + $0x50] sm:$0xff]   ;;  %v3882_v25 = vld [vmem:[%s4311_s24 + $0x18] sm:$0xff]   ;;  %v3884_v27 = vld [vmem:[%s4311_s24 + $0x20] sm:$0xff]  }
 0x125   : > { %3494 = vmatprep.subr.bf16.mxu0 %v4128_v18  ;;  %3514 = vmatprep.subr.bf16.mxu1 %v4128_v18  ;;  %v3883_v26 = vld [vmem:[%s4311_s24 + $0x58] sm:$0xff]   ;;  %v3885_v28 = vld [vmem:[%s4311_s24 + $0x60] sm:$0xff]   ;;  %v3886_v29 = vld [vmem:[%s4311_s24 + $0x28] sm:$0xff]  }
 0x128   : > { %3495 = vmatpush3.bf16.msra.mxu0 %v3838_v30  ;;  %3515 = vmatpush3.bf16.msra.mxu1 %v3839_v31  ;;  %v3887_v30 = vld [vmem:[%s4311_s24 + $0x68] sm:$0xff]   ;;  %v3888_v31 = vld [vmem:[%s4311_s24 + $0x30] sm:$0xff]  }
 0x129   : > { %3496 = vmatprep.subr.bf16.mxu0 %v4128_v18  ;;  %3516 = vmatprep.subr.bf16.mxu1 %v4128_v18 }
 0x12c   : > { %3497 = vmatpush3.bf16.msra.mxu0 %v3840_v32  ;;  %3517 = vmatpush3.bf16.msra.mxu1 %v3841_v33  ;;  %v3889_v32 = vld [vmem:[%s4311_s24 + $0x70] sm:$0xff]   ;;  %v3890_v33 = vld [vmem:[%s4311_s24 + $0x38] sm:$0xff]  }
 0x12d   : > { %3498 = vmatprep.subr.bf16.mxu0 %v4128_v18  ;;  %3518 = vmatprep.subr.bf16.mxu1 %v4128_v18 }
 0x130   : > { %3499 = vmatpush3.bf16.msra.mxu0 %v3842_v34  ;;  %3519 = vmatpush3.bf16.msra.mxu1 %v3843_v35  ;;  %v3891_v34 = vld [vmem:[%s4311_s24 + $0x78] sm:$0xff]  }
 0x131   : > { %3524 = vmatprep.subr.bf16.mxu0 %v4128_v18  ;;  %3544 = vmatprep.subr.bf16.mxu1 %v4128_v18 }
 0x1a6   : > { %v745_v36 = vpop.xlane.xlu0 %744 }
 0x1a7   : > { %v749_v37 = vmul.f32 0.0078125, %v745_v36 }
 0x1a9   : > { %v751_v38 = vadd.f32 1e-06, %v749_v37 }
 0x1aa   : > { %v747_v39 = vpop.xlane.xlu0 %746 }
 0x1ab   : > { %3964 = vrsqrt.f32 %v751_v38  ;;  %v750_v40 = vmul.f32 0.0078125, %v747_v39 }
 0x1ad   : > { %v752_v41 = vadd.f32 1e-06, %v750_v40 }
 0x1af   : > { %3966 = vrsqrt.f32 %v752_v41 }
 0x1b5   : > { %v3965_v42 = vpop.eup %3964 }
 0x1b6   : > { %v755_v43 = vmul.f32 %v3965_v42, %v4356_v15  ;;  %v3873_v15 = vld [vmem:[%s4306_s12 + $0x70] sm:$0xff]  }
 0x1b8   : > { %v764_v47 = vmul.f32 %v3174_v45, %v755_v43 }
 0x1b9   : > { %v3967_v44 = vpop.eup %3966 }
 0x1ba   : > { %v756_v46 = vmul.f32 %v3967_v44, %v4358_v16  ;;  %v3874_v16 = vld [vmem:[%s4306_s12 + $0x38] sm:$0xff]  }
 0x1bc   : > { %v765_v48 = vmul.f32 %v3174_v45, %v756_v46 }
 0x1be   : > { %v4411_v51 = vpack.c.bf16 %v765_v48, %v764_v47 }
 0x1c0   : > { %3501 = vmatmul.mubr.bf16.vlgmr.msra.gmra.mrb[0].mxu0 %v4411_v51  ;;  %3521 = vmatmul.mubr.bf16.vlgmr.msra.gmra.mrb[0].mxu1 %v4411_v51 }
 0x1c1   : > { %3525 = vmatpush3.bf16.msra.mxu0 %v3844_v49  ;;  %3545 = vmatpush3.bf16.msra.mxu1 %v3845_v50 }
 0x1c2   : > { %3526 = vmatprep.subr.bf16.mxu0 %v4128_v18  ;;  %3546 = vmatprep.subr.bf16.mxu1 %v4128_v18 }
 0x1c3   : > { %3540 = vmatprep.mubr.msk.bf16.mxu0 %vm4129_vm2, %v4128_v18  ;;  %3560 = vmatprep.mubr.msk.bf16.mxu1 %vm4129_vm2, %v4128_v18 }
 0x1c5   : > { %3527 = vmatpush3.bf16.msra.mxu0 %v3846_v52  ;;  %3547 = vmatpush3.bf16.msra.mxu1 %v3847_v53 }
 0x1c6   : > { %3528 = vmatprep.subr.bf16.mxu0 %v4128_v18  ;;  %3548 = vmatprep.subr.bf16.mxu1 %v4128_v18 }
 0x1c9   : > { %3529 = vmatpush3.bf16.msra.mxu0 %v3848_v54  ;;  %3549 = vmatpush3.bf16.msra.mxu1 %v3849_v55 }
 0x1ca   : > { %3530 = vmatprep.subr.bf16.mxu0 %v4128_v18  ;;  %3550 = vmatprep.subr.bf16.mxu1 %v4128_v18 }
 0x1cd   : > { %3531 = vmatpush3.bf16.msra.mxu0 %v3850_v56  ;;  %3551 = vmatpush3.bf16.msra.mxu1 %v3851_v57 }
 0x1ce   : > { %3532 = vmatprep.subr.bf16.mxu0 %v4128_v18  ;;  %3552 = vmatprep.subr.bf16.mxu1 %v4128_v18 }
 0x1d1   : > { %3533 = vmatpush3.bf16.msra.mxu0 %v3852_v58  ;;  %3553 = vmatpush3.bf16.msra.mxu1 %v3853_v59 }
 0x1d2   : > { %3534 = vmatprep.subr.bf16.mxu0 %v4128_v18  ;;  %3554 = vmatprep.subr.bf16.mxu1 %v4128_v18 }
 0x1d5   : > { %3535 = vmatpush3.bf16.msra.mxu0 %v3854_v60  ;;  %3555 = vmatpush3.bf16.msra.mxu1 %v3855_v61 }
 0x1d6   : > { %3536 = vmatprep.subr.bf16.mxu0 %v4128_v18  ;;  %3556 = vmatprep.subr.bf16.mxu1 %v4128_v18 }
 0x1d9   : > { %3537 = vmatpush3.bf16.msra.mxu0 %v3856_v62  ;;  %3557 = vmatpush3.bf16.msra.mxu1 %v3857_v63 }
 0x1da   : > { %3538 = vmatprep.subr.bf16.mxu0 %v4128_v18  ;;  %3558 = vmatprep.subr.bf16.mxu1 %v4128_v18 }
 0x1dd   : > { %3539 = vmatpush3.bf16.msra.mxu0 %v3858_v0  ;;  %3559 = vmatpush3.bf16.msra.mxu1 %v3859_v1 }
 0x1de   : > { %3564 = vmatprep.subr.bf16.mxu0 %v4128_v18  ;;  %3584 = vmatprep.subr.bf16.mxu1 %v4128_v18 }
 0x1e0   : > { %3541 = vmatmul.mubr.bf16.vlgmr.msra.gmra.mrb[4].mxu0 %v4411_v51  ;;  %3561 = vmatmul.mubr.bf16.vlgmr.msra.gmra.mrb[4].mxu1 %v4411_v51 }
 0x1e1   : > { %3565 = vmatpush3.bf16.msra.mxu0 %v3860_v2  ;;  %3585 = vmatpush3.bf16.msra.mxu1 %v3861_v3 }
 0x1e2   : > { %3566 = vmatprep.subr.bf16.mxu0 %v4128_v18  ;;  %3586 = vmatprep.subr.bf16.mxu1 %v4128_v18 }
 0x1e3   : > { %3580 = vmatprep.mubr.msk.bf16.mxu0 %vm4129_vm2, %v4128_v18  ;;  %3600 = vmatprep.mubr.msk.bf16.mxu1 %vm4129_vm2, %v4128_v18 }
 0x1e5   : > { %3567 = vmatpush3.bf16.msra.mxu0 %v3862_v4  ;;  %3587 = vmatpush3.bf16.msra.mxu1 %v3863_v5 }
 0x1e6   : > { %3568 = vmatprep.subr.bf16.mxu0 %v4128_v18  ;;  %3588 = vmatprep.subr.bf16.mxu1 %v4128_v18 }
 0x1e9   : > { %3569 = vmatpush3.bf16.msra.mxu0 %v3864_v6  ;;  %3589 = vmatpush3.bf16.msra.mxu1 %v3865_v7 }
 0x1ea   : > { %3570 = vmatprep.subr.bf16.mxu0 %v4128_v18  ;;  %3590 = vmatprep.subr.bf16.mxu1 %v4128_v18 }
 0x1ed   : > { %3571 = vmatpush3.bf16.msra.mxu0 %v3866_v8  ;;  %3591 = vmatpush3.bf16.msra.mxu1 %v3867_v9 }
 0x1ee   : > { %3572 = vmatprep.subr.bf16.mxu0 %v4128_v18  ;;  %3592 = vmatprep.subr.bf16.mxu1 %v4128_v18 }
 0x1f1   : > { %3573 = vmatpush3.bf16.msra.mxu0 %v3868_v10  ;;  %3593 = vmatpush3.bf16.msra.mxu1 %v3869_v11 }
 0x1f2   : > { %3574 = vmatprep.subr.bf16.mxu0 %v4128_v18  ;;  %3594 = vmatprep.subr.bf16.mxu1 %v4128_v18 }
 0x1f5   : > { %3575 = vmatpush3.bf16.msra.mxu0 %v3870_v12  ;;  %3595 = vmatpush3.bf16.msra.mxu1 %v3871_v13 }
 0x1f6   : > { %3576 = vmatprep.subr.bf16.mxu0 %v4128_v18  ;;  %3596 = vmatprep.subr.bf16.mxu1 %v4128_v18 }
 0x1f9   : > { %3577 = vmatpush3.bf16.msra.mxu0 %v3872_v14  ;;  %3597 = vmatpush3.bf16.msra.mxu1 %v3873_v15 }
 0x1fa   : > { %3578 = vmatprep.subr.bf16.mxu0 %v4128_v18  ;;  %3598 = vmatprep.subr.bf16.mxu1 %v4128_v18 }
 0x1fd   : > { %3579 = vmatpush3.bf16.msra.mxu0 %v3874_v16  ;;  %3599 = vmatpush3.bf16.msra.mxu1 %v3875_v17 }
 0x1fe   : > { %3604 = vmatprep.subr.bf16.mxu0 %v4128_v18  ;;  %3624 = vmatprep.subr.bf16.mxu1 %v4128_v18 }
 0x200   : > { %3581 = vmatmul.mubr.bf16.vlgmr.msra.gmra.mrb[8].mxu0 %v4411_v51  ;;  %3601 = vmatmul.mubr.bf16.vlgmr.msra.gmra.mrb[8].mxu1 %v4411_v51 }
 0x201   : > { %3605 = vmatpush3.bf16.msra.mxu0 %v3876_v19  ;;  %3625 = vmatpush3.bf16.msra.mxu1 %v3877_v20 }
 0x202   : > { %3606 = vmatprep.subr.bf16.mxu0 %v4128_v18  ;;  %3626 = vmatprep.subr.bf16.mxu1 %v4128_v18 }
 0x203   : > { %3620 = vmatprep.mubr.msk.bf16.mxu0 %vm4129_vm2, %v4128_v18  ;;  %3640 = vmatprep.mubr.msk.bf16.mxu1 %vm4129_vm2, %v4128_v18 }
 0x205   : > { %3607 = vmatpush3.bf16.msra.mxu0 %v3878_v21  ;;  %3627 = vmatpush3.bf16.msra.mxu1 %v3879_v22 }
 0x206   : > { %3608 = vmatprep.subr.bf16.mxu0 %v4128_v18  ;;  %3628 = vmatprep.subr.bf16.mxu1 %v4128_v18 }
 0x209   : > { %3609 = vmatpush3.bf16.msra.mxu0 %v3880_v23  ;;  %3629 = vmatpush3.bf16.msra.mxu1 %v3881_v24 }
 0x20a   : > { %3610 = vmatprep.subr.bf16.mxu0 %v4128_v18  ;;  %3630 = vmatprep.subr.bf16.mxu1 %v4128_v18 }
 0x20d   : > { %3611 = vmatpush3.bf16.msra.mxu0 %v3882_v25  ;;  %3631 = vmatpush3.bf16.msra.mxu1 %v3883_v26 }
 0x20e   : > { %3612 = vmatprep.subr.bf16.mxu0 %v4128_v18  ;;  %3632 = vmatprep.subr.bf16.mxu1 %v4128_v18 }
 0x211   : > { %3613 = vmatpush3.bf16.msra.mxu0 %v3884_v27  ;;  %3633 = vmatpush3.bf16.msra.mxu1 %v3885_v28 }
 0x212   : > { %3614 = vmatprep.subr.bf16.mxu0 %v4128_v18  ;;  %3634 = vmatprep.subr.bf16.mxu1 %v4128_v18 }
 0x215   : > { %3615 = vmatpush3.bf16.msra.mxu0 %v3886_v29  ;;  %3635 = vmatpush3.bf16.msra.mxu1 %v3887_v30 }
 0x216   : > { %3616 = vmatprep.subr.bf16.mxu0 %v4128_v18  ;;  %3636 = vmatprep.subr.bf16.mxu1 %v4128_v18 }
 0x219   : > { %3617 = vmatpush3.bf16.msra.mxu0 %v3888_v31  ;;  %3637 = vmatpush3.bf16.msra.mxu1 %v3889_v32 }
 0x21a   : > { %3618 = vmatprep.subr.bf16.mxu0 %v4128_v18  ;;  %3638 = vmatprep.subr.bf16.mxu1 %v4128_v18 }
 0x21d   : > { %3619 = vmatpush3.bf16.msra.mxu0 %v3890_v33  ;;  %3639 = vmatpush3.bf16.msra.mxu1 %v3891_v34 }
 0x21e   : > { %3644 = vmatprep.subr.bf16.mxu1 %v4128_v18  ;;  %3668 = vmatprep.subr.bf16.mxu0 %v4128_v18 }
 0x220   : > { %3621 = vmatmul.mubr.bf16.vlgmr.msra.gmra.mrb[12].mxu0 %v4411_v51  ;;  %3641 = vmatmul.mubr.bf16.vlgmr.msra.gmra.mrb[12].mxu1 %v4411_v51 }
 0x221   : > { %3646 = vmatprep.mubr.msk.bf16.mxu1 %vm4129_vm2, %v4128_v18  ;;  %3670 = vmatprep.mubr.msk.bf16.mxu0 %vm4129_vm2, %v4128_v18 }
 0x293   : > { %v913_v35 = vpop.f32.mrb[0].mxu0  ;;  %v1002_v36 = vpop.f32.mrb[0].mxu1 }
 0x294   : > { %v3502_v37 = vpop.f32.mrb[1].mxu0  ;;  %v3522_v38 = vpop.f32.mrb[1].mxu1 }
 0x295   : > { %v916_v39 = vpop.f32.mrb[2].mxu0  ;;  %v1005_v40 = vpop.f32.mrb[2].mxu1 }
 0x296   : > { %v1611_v41 = vpack.c.bf16 %v916_v39, %v913_v35  ;;  %v1612_v42 = vpack.c.bf16 %v1005_v40, %v1002_v36  ;;  %v3503_v43 = vpop.f32.mrb[3].mxu0  ;;  %v3523_v44 = vpop.f32.mrb[3].mxu1 }
 0x2b3   : > { %v1091_v45 = vpop.f32.mrb[4].mxu0  ;;  %v1180_v46 = vpop.f32.mrb[4].mxu1 }
 0x2b4   : > { %v3542_v47 = vpop.f32.mrb[5].mxu0  ;;  %v3562_v48 = vpop.f32.mrb[5].mxu1 }
 0x2b5   : > { %v1094_v49 = vpop.f32.mrb[6].mxu0  ;;  %v1183_v50 = vpop.f32.mrb[6].mxu1 }
 0x2b6   : > { %v1613_v51 = vpack.c.bf16 %v1094_v49, %v1091_v45  ;;  %v1614_v52 = vpack.c.bf16 %v1183_v50, %v1180_v46  ;;  %v3543_v53 = vpop.f32.mrb[7].mxu0  ;;  %v3563_v54 = vpop.f32.mrb[7].mxu1 }
 0x2d3   : > { %v1301_v55 = vpop.f32.mrb[8].mxu0  ;;  %v1390_v56 = vpop.f32.mrb[8].mxu1 }
 0x2d4   : > { %v3582_v57 = vpop.f32.mrb[9].mxu0  ;;  %v3602_v58 = vpop.f32.mrb[9].mxu1 }
 0x2d5   : > { %v1304_v59 = vpop.f32.mrb[10].mxu0  ;;  %v1393_v60 = vpop.f32.mrb[10].mxu1 }
 0x2d6   : > { %v1607_v61 = vpack.c.bf16 %v1304_v59, %v1301_v55  ;;  %v1608_v62 = vpack.c.bf16 %v1393_v60, %v1390_v56  ;;  %v3583_v63 = vpop.f32.mrb[11].mxu0  ;;  %v3603_v0 = vpop.f32.mrb[11].mxu1 }
 0x2d8   : > { %v1620_v1 = vsel %vm1615_vm3, %v1607_v61, 0  ;;  %v1711_v2 = vsel %vm1615_vm3, %v1608_v62, 0 }
 0x2d9   : > { %3645 = vmatpush3.bf16.xpose.msra.mxu1 %v1620_v1 }
 0x2da   : > { %3650 = vmatprep.subr.bf16.mxu1 %v4128_v18 }
 0x2e0   : > { %3647 = vmatmul.mubr.msk.bf16.vlgmr.msra.gmra.mrb[16].mxu1 %vm1615_vm3, %v1611_v41 }
 0x2e1   : > { %3651 = vmatpush3.bf16.xpose.msra.mxu1 %v1620_v1  ;;  %3652 = vmatprep.mubr.msk.bf16.mxu1 %vm4129_vm2, %v4128_v18 }
 0x2e2   : > { %3656 = vmatprep.subr.bf16.mxu1 %v4128_v18 }
 0x2e8   : > { %3653 = vmatmul.mubr.msk.bf16.vlgmr.msra.gmra.mrb[20].mxu1 %vm1615_vm3, %v1612_v42 }
 0x2e9   : > { %3657 = vmatpush3.bf16.xpose.msra.mxu1 %v1711_v2  ;;  %3658 = vmatprep.mubr.msk.bf16.mxu1 %vm4129_vm2, %v4128_v18 }
 0x2ea   : > { %3662 = vmatprep.subr.bf16.mxu1 %v4128_v18 }
 0x2f0   : > { %3659 = vmatmul.mubr.msk.bf16.vlgmr.msra.gmra.mrb[24].mxu1 %vm1615_vm3, %v1613_v51 }
 0x2f1   : > { %3663 = vmatpush3.bf16.xpose.msra.mxu1 %v1711_v2  ;;  %3664 = vmatprep.mubr.msk.bf16.mxu1 %vm4129_vm2, %v4128_v18 }
 0x2f2   : > { %3674 = vmatprep.subr.bf16.mxu1 %v4128_v18 }
 0x2f3   : > { %v1511_v3 = vpop.f32.mrb[12].mxu0  ;;  %v1600_v4 = vpop.f32.mrb[12].mxu1 }
 0x2f4   : > { %v3622_v5 = vpop.f32.mrb[13].mxu0  ;;  %v3642_v6 = vpop.f32.mrb[13].mxu1 }
 0x2f5   : > { %v1514_v7 = vpop.f32.mrb[14].mxu0  ;;  %v1603_v8 = vpop.f32.mrb[14].mxu1 }
 0x2f6   : > { %v1609_v9 = vpack.c.bf16 %v1514_v7, %v1511_v3  ;;  %v4546_v10 = vpack.c.bf16 %v1603_v8, %v1600_v4  ;;  %v3623_v11 = vpop.f32.mrb[15].mxu0  ;;  %v3643_v12 = vpop.f32.mrb[15].mxu1 }
 0x2f8   : > { %3665 = vmatmul.mubr.msk.bf16.vlgmr.msra.gmra.mrb[28].mxu1 %vm1615_vm3, %v1614_v52  ;;  %3669 = vmatpush3.bf16.msra.mxu0 %v1609_v9 }
 0x2f9   : > { %3675 = vmatpush3.bf16.msra.mxu1 %v1609_v9  ;;  %3680 = vmatprep.subr.bf16.mxu0 %v4128_v18 }
 0x2fa   : > { %3676 = vmatprep.mubr.msk.bf16.mxu1 %vm4129_vm2, %v4128_v18  ;;  %3686 = vmatprep.subr.bf16.mxu1 %v4128_v18 }
 0x3b3   : > { %v1656_v13 = vpop.f32.mrb[16].mxu1 }
 0x3b4   : > { %v1798_v14 = vmul.f32 0.17677669, %v1656_v13  ;;  %v3648_v15 = vpop.f32.mrb[17].mxu1 }
 0x3b5   : > { %v1659_v16 = vpop.f32.mrb[18].mxu1 }
 0x3b6   : > { %v1799_v17 = vmul.f32 0.17677669, %v1659_v16  ;;  %v3649_v19 = vpop.f32.mrb[19].mxu1  ;;  %v1807_v20 = vsel %vm1806_vm4, %v1798_v14, -inf }
 0x3b7   : > { %1808 = vmax.xlane.f32.xlu1 %v1807_v20 }
 0x3b8   : > { %v1810_v21 = vsel %vm1806_vm4, %v1799_v17, -inf }
 0x3bb   : > { %1811 = vmax.xlane.f32.xlu1 %v1810_v21  ;;  %v1700_v22 = vpop.f32.mrb[20].mxu1 }
 0x3bc   : > { %v1800_v23 = vmul.f32 0.17677669, %v1700_v22  ;;  %v3654_v24 = vpop.f32.mrb[21].mxu1 }
 0x3bd   : > { %v1703_v25 = vpop.f32.mrb[22].mxu1 }
 0x3be   : > { %v1801_v26 = vmul.f32 0.17677669, %v1703_v25  ;;  %v3655_v27 = vpop.f32.mrb[23].mxu1  ;;  %v1813_v28 = vsel %vm1806_vm4, %v1800_v23, -inf }
 0x3bf   : > { %1814 = vmax.xlane.f32.xlu0 %v1813_v28 }
 0x3c0   : > { %v1816_v29 = vsel %vm1806_vm4, %v1801_v26, -inf }
 0x3c1   : > { %1817 = vmax.xlane.f32.xlu1 %v1816_v29 }
 0x3c3   : > { %v1747_v30 = vpop.f32.mrb[24].mxu1 }
 0x3c4   : > { %v1802_v31 = vmul.f32 0.17677669, %v1747_v30  ;;  %v3660_v32 = vpop.f32.mrb[25].mxu1 }
 0x3c5   : > { %v1750_v33 = vpop.f32.mrb[26].mxu1 }
 0x3c6   : > { %v1803_v34 = vmul.f32 0.17677669, %v1750_v33  ;;  %v3661_v35 = vpop.f32.mrb[27].mxu1  ;;  %v1819_v36 = vsel %vm1806_vm4, %v1802_v31, -inf }
 0x3c7   : > { %1820 = vmax.xlane.f32.xlu0 %v1819_v36 }
 0x3c8   : > { %v1822_v37 = vsel %vm1806_vm4, %v1803_v34, -inf }
 0x3c9   : > { %1823 = vmax.xlane.f32.xlu1 %v1822_v37 }
 0x3cb   : > { %v1791_v38 = vpop.f32.mrb[28].mxu1 }
 0x3cc   : > { %v1804_v39 = vmul.f32 0.17677669, %v1791_v38  ;;  %v3666_v40 = vpop.f32.mrb[29].mxu1 }
 0x3cd   : > { %v1794_v41 = vpop.f32.mrb[30].mxu1 }
 0x3ce   : > { %v1805_v42 = vmul.f32 0.17677669, %v1794_v41  ;;  %v3667_v43 = vpop.f32.mrb[31].mxu1  ;;  %v1825_v44 = vsel %vm1806_vm4, %v1804_v39, -inf }
 0x3cf   : > { %1826 = vmax.xlane.f32.xlu0 %v1825_v44 }
 0x3d0   : > { %v1828_v45 = vsel %vm1806_vm4, %v1805_v42, -inf }
 0x3d1   : > { %1829 = vmax.xlane.f32.xlu1 %v1828_v45 }
 0x444   : > { %v1809_v46 = vpop.xlane.xlu1 %1808 }
 0x445   : > { %v1831_v47 = vsub.f32 %v1798_v14, %v1809_v46  ;;  %v3892_v46 = vld [vmem:[%s4317_s28] sm:$0xff]  }
 0x447   : > { %v1839_v48 = vmul.f32 1.442695, %v1831_v47 }
 0x448   : > { %v1812_v49 = vpop.xlane.xlu1 %1811 }
 0x449   : > { %3968 = vpow2.f32 %v1839_v48  ;;  %v1832_v50 = vsub.f32 %v1799_v17, %v1812_v49 }
 0x44b   : > { %v1841_v51 = vmul.f32 1.442695, %v1832_v50 }
 0x44c   : > { %v1815_v52 = vpop.xlane.xlu0 %1814 }
 0x44d   : > { %3970 = vpow2.f32 %v1841_v51  ;;  %v1833_v53 = vsub.f32 %v1800_v23, %v1815_v52  ;;  %v3893_v52 = vld [vmem:[%s4317_s28 + $0x8] sm:$0xff]  }
 0x44e   : > { %v1818_v54 = vpop.xlane.xlu1 %1817 }
 0x44f   : > { %v1843_v55 = vmul.f32 1.442695, %v1833_v53  ;;  %v1834_v56 = vsub.f32 %v1801_v26, %v1818_v54  ;;  %v3894_v53 = vld [vmem:[%s4317_s28 + $0x10] sm:$0xff]   ;;  %v3895_v54 = vld [vmem:[%s4317_s28 + $0x18] sm:$0xff]  }
 0x451   : > { %3972 = vpow2.f32 %v1843_v55  ;;  %v1845_v57 = vmul.f32 1.442695, %v1834_v56 }
 0x453   : > { %v3969_v58 = vpop.eup %3968  ;;  %3974 = vpow2.f32 %v1845_v57 }
 0x454   : > { %v1821_v59 = vpop.xlane.xlu0 %1820  ;;  %v1855_v60 = vsel %vm1806_vm4, %v3969_v58, 0.0 }
 0x455   : > { %v1835_v61 = vsub.f32 %v1802_v31, %v1821_v59  ;;  %1856 = vadd.xlane.f32.xlu0 %v1855_v60 }
 0x456   : > { %v1824_v62 = vpop.xlane.xlu1 %1823 }
 0x457   : > { %v3971_v63 = vpop.eup %3970  ;;  %v1847_v0 = vmul.f32 1.442695, %v1835_v61  ;;  %v1836_v1 = vsub.f32 %v1803_v34, %v1824_v62  ;;  %v3897_v62 = vld [vmem:[%s4317_s28 + $0x28] sm:$0xff]  }
 0x458   : > { %v1858_v2 = vsel %vm1806_vm4, %v3971_v63, 0.0 }
 0x459   : > { %3976 = vpow2.f32 %v1847_v0  ;;  %v1849_v3 = vmul.f32 1.442695, %v1836_v1  ;;  %1859 = vadd.xlane.f32.xlu1 %v1858_v2  ;;  %v3898_v1 = vld [vmem:[%s4317_s28 + $0x30] sm:$0xff]  }
 0x45b   : > { %v3973_v4 = vpop.eup %3972  ;;  %3978 = vpow2.f32 %v1849_v3 }
 0x45c   : > { %v1827_v5 = vpop.xlane.xlu0 %1826  ;;  %v1861_v6 = vsel %vm1806_vm4, %v3973_v4, 0.0 }
 0x45d   : > { %v3975_v7 = vpop.eup %3974  ;;  %v1837_v8 = vsub.f32 %v1804_v39, %v1827_v5  ;;  %1862 = vadd.xlane.f32.xlu0 %v1861_v6 }
 0x45e   : > { %v1830_v9 = vpop.xlane.xlu1 %1829  ;;  %v1864_v11 = vsel %vm1806_vm4, %v3975_v7, 0.0 }
 0x45f   : > { %v1851_v12 = vmul.f32 1.442695, %v1837_v8  ;;  %v1838_v13 = vsub.f32 %v1805_v42, %v1830_v9  ;;  %1865 = vadd.xlane.f32.xlu1 %v1864_v11 }
 0x461   : > { %3980 = vpow2.f32 %v1851_v12  ;;  %v1853_v14 = vmul.f32 1.442695, %v1838_v13 }
 0x463   : > { %v3977_v15 = vpop.eup %3976  ;;  %3982 = vpow2.f32 %v1853_v14 }
 0x464   : > { %v1867_v16 = vsel %vm1806_vm4, %v3977_v15, 0.0 }
 0x465   : > { %v3979_v17 = vpop.eup %3978  ;;  %1868 = vadd.xlane.f32.xlu0 %v1867_v16  ;;  %v3902_v16 = vld [vmem:[%s4326_s13 + $0x4] ss:$8 sps:$4 sm:$0xff]  }
 0x466   : > { %v1870_v19 = vsel %vm1806_vm4, %v3979_v17, 0.0 }
 0x467   : > { %1871 = vadd.xlane.f32.xlu1 %v1870_v19  ;;  %v3905_v19 = vld [vmem:[%s4331_s2 + $0x4] ss:$8 sps:$4 sm:$0xff]  }
 0x46b   : > { %v3981_v20 = vpop.eup %3980 }
 0x46c   : > { %v1873_v21 = vsel %vm1806_vm4, %v3981_v20, 0.0 }
 0x46d   : > { %v3983_v22 = vpop.eup %3982  ;;  %1874 = vadd.xlane.f32.xlu0 %v1873_v21  ;;  %v3911_v21 = vld [vmem:[%s4331_s2 + $0x14] ss:$8 sps:$4 sm:$0xff]  }
 0x46e   : > { %v1876_v23 = vsel %vm1806_vm4, %v3983_v22, 0.0 }
 0x46f   : > { %1877 = vadd.xlane.f32.xlu1 %v1876_v23  ;;  %v3909_v23 = vld [vmem:[%s4331_s2 + $0x10] ss:$8 sps:$4 sm:$0xff]  }
 0x4e2   : > { %v1857_v24 = vpop.xlane.xlu0 %1856 }
 0x4e3   : > { %3984 = vrcp.f32 %v1857_v24  ;;  %v3914_v24 = vld [vmem:[%s4326_s13 + $0x24] ss:$8 sps:$4 sm:$0xff]  }
 0x4e6   : > { %v1860_v25 = vpop.xlane.xlu1 %1859 }
 0x4e7   : > { %3986 = vrcp.f32 %v1860_v25  ;;  %v3917_v25 = vld [vmem:[%s4331_s2 + $0x24] ss:$8 sps:$4 sm:$0xff]  }
 0x4ea   : > { %v1863_v26 = vpop.xlane.xlu0 %1862 }
 0x4eb   : > { %3988 = vrcp.f32 %v1863_v26  ;;  %v3912_v26 = vld [vmem:[%s4326_s13 + $0x20] ss:$8 sps:$4 sm:$0xff]  }
 0x4ec   : > { %v1866_v27 = vpop.xlane.xlu1 %1865 }
 0x4ed   : > { %3990 = vrcp.f32 %v1866_v27  ;;  %v3985_v28 = vpop.eup %3984  ;;  %v3915_v27 = vld [vmem:[%s4331_s2 + $0x20] ss:$8 sps:$4 sm:$0xff]  }
 0x4ee   : > { %v1887_v30 = vmul.f32 %v3985_v28, %v3969_v58  ;;  %v3896_v58 = vld [vmem:[%s4317_s28 + $0x20] sm:$0xff]  }
 0x4f1   : > { %v3987_v29 = vpop.eup %3986 }
 0x4f2   : > { %v1888_v31 = vmul.f32 %v3987_v29, %v3971_v63  ;;  %v1869_v32 = vpop.xlane.xlu0 %1868 }
 0x4f3   : > { %3992 = vrcp.f32 %v1869_v32 }
 0x4f4   : > { %v1872_v33 = vpop.xlane.xlu1 %1871  ;;  %v1895_v34 = vpack.c.bf16 %v1888_v31, %v1887_v30 }
 0x4f5   : > { %v3989_v35 = vpop.eup %3988  ;;  %3994 = vrcp.f32 %v1872_v33 }
 0x4f6   : > { %3671 = vmatmul.mubr.msk.bf16.vlgmr.msra.gmra.mrb[16].mxu0 %vm1806_vm4, %v1895_v34  ;;  %v1889_v37 = vmul.f32 %v3989_v35, %v3973_v4  ;;  %v3899_v4 = vld [vmem:[%s4317_s28 + $0x38] sm:$0xff]   ;;  %s4817_s28 = sld [smem:[#allocation22_spill]] (!%p3312_p1) }
 0x4f7   : > { %v3991_v36 = vpop.eup %3990  ;;  %3681 = vmatpush3.bf16.msra.mxu0 %v4546_v10  ;;  %3682 = vmatprep.mubr.msk.bf16.mxu0 %vm4129_vm2, %v4128_v18 }
 0x4f8   : > { %v1890_v38 = vmul.f32 %v3991_v36, %v3975_v7  ;;  %3692 = vmatprep.subr.bf16.mxu0 %v4128_v18 }
 0x4fa   : > { %v1875_v39 = vpop.xlane.xlu0 %1874  ;;  %v1896_v40 = vpack.c.bf16 %v1890_v38, %v1889_v37 }
 0x4fb   : > { %3996 = vrcp.f32 %v1875_v39 }
 0x4fc   : > { %v1878_v41 = vpop.xlane.xlu1 %1877  ;;  %3677 = vmatmul.mubr.msk.bf16.vlgmr.msra.gmra.mrb[32].mxu1 %vm1806_vm4, %v1896_v40 }
 0x4fd   : > { %v3993_v42 = vpop.eup %3992  ;;  %3998 = vrcp.f32 %v1878_v41  ;;  %3687 = vmatpush3.bf16.msra.mxu1 %v4546_v10  ;;  %3688 = vmatprep.mubr.msk.bf16.mxu1 %vm4129_vm2, %v4128_v18 }
 0x4fe   : > { %3700 = vmatprep.subr.bf16.mxu1 %v4128_v18  ;;  %v1891_v44 = vmul.f32 %v3993_v42, %v3977_v15  ;;  %v3900_v15 = vld [vmem:[%s4326_s13] ss:$8 sps:$4 sm:$0xff]  }
 0x4ff   : > { %v3995_v43 = vpop.eup %3994 }
 0x500   : > { %v1892_v45 = vmul.f32 %v3995_v43, %v3979_v17  ;;  %v3903_v17 = vld [vmem:[%s4331_s2] ss:$8 sps:$4 sm:$0xff]  }
 0x502   : > { %v1897_v47 = vpack.c.bf16 %v1892_v45, %v1891_v44 }
 0x504   : > { %3683 = vmatmul.mubr.msk.bf16.vlgmr.msra.gmra.mrb[20].mxu0 %vm1806_vm4, %v1897_v47 }
 0x505   : > { %v3997_v48 = vpop.eup %3996  ;;  %3693 = vmatpush3.bf16.msra.mxu0 %v3892_v46  ;;  %3696 = vmatprep.mubr.msk.bf16.mxu0 %vm4129_vm2, %v4128_v18 }
 0x506   : > { %3694 = vmatprep.subr.bf16.mxu0 %v4128_v18  ;;  %v1893_v49 = vmul.f32 %v3997_v48, %v3981_v20  ;;  %v3908_v20 = vld [vmem:[%s4326_s13 + $0x14] ss:$8 sps:$4 sm:$0xff]   ;;  %v4020_v48 = vld [vmem:[#allocation2] sm:$0xff] }
 0x507   : > { %v3999_v10 = vpop.eup %3998 }
 0x508   : > { %v1894_v50 = vmul.f32 %v3999_v10, %v3983_v22  ;;  %v3906_v22 = vld [vmem:[%s4326_s13 + $0x10] ss:$8 sps:$4 sm:$0xff]  }
 0x509   : > { %3695 = vmatpush3.bf16.msra.mxu0 %v3893_v52 }
 0x50a   : > { %v1898_v51 = vpack.c.bf16 %v1894_v50, %v1893_v49  ;;  %3708 = vmatprep.subr.bf16.mxu0 %v4128_v18 }
 0x50c   : > { %3689 = vmatmul.mubr.msk.bf16.vlgmr.msra.gmra.mrb[36].mxu1 %vm1806_vm4, %v1898_v51  ;;  %v4021_v51 = vld [vmem:[#allocation2 + $0x8] sm:$0xff] }
 0x50d   : > { %3704 = vmatprep.mubr.msk.bf16.mxu1 %vm4129_vm2, %v4128_v18  ;;  %3701 = vmatpush3.bf16.msra.mxu1 %v3894_v53 }
 0x50e   : > { %3702 = vmatprep.subr.bf16.mxu1 %v4128_v18 }
 0x511   : > { %3703 = vmatpush3.bf16.msra.mxu1 %v3895_v54 }
 0x512   : > { %3716 = vmatprep.subr.bf16.mxu1 %v4128_v18 }
 0x5c9   : > { %v1936_v55 = vpop.f32.mrb[16].mxu0 }
 0x5ca   : > { %v3672_v56 = vpop.f32.mrb[17].mxu0 }
 0x5cb   : > { %v1939_v57 = vpop.f32.mrb[18].mxu0  ;;  %v3923_v56 = vld [vmem:[%s4331_s2 + $0x34] ss:$8 sps:$4 sm:$0xff]  }
 0x5cc   : > { %v2075_v59 = vpack.c.bf16 %v1939_v57, %v1936_v55  ;;  %v3673_v60 = vpop.f32.mrb[19].mxu0  ;;  %v3920_v55 = vld [vmem:[%s4326_s13 + $0x34] ss:$8 sps:$4 sm:$0xff]   ;;  %v3918_v57 = vld [vmem:[%s4326_s13 + $0x30] ss:$8 sps:$4 sm:$0xff]  }
 0x5cd   : > { %v3926_v60 = vld [vmem:[%s4326_s13 + $0x44] ss:$8 sps:$4 sm:$0xff]  }
 0x5ce   : > { %3697 = vmatmul.mubr.msk.bf16.vlgmr.msra.gmra.mrb[24].mxu0 %vm1615_vm3, %v2075_v59  ;;  %v3924_v59 = vld [vmem:[%s4326_s13 + $0x40] ss:$8 sps:$4 sm:$0xff]  }
 0x5cf   : > { %v1980_v61 = vpop.f32.mrb[32].mxu1  ;;  %3709 = vmatpush3.bf16.msra.mxu0 %v3896_v58  ;;  %3712 = vmatprep.mubr.msk.bf16.mxu0 %vm4129_vm2, %v4128_v18  ;;  %v3921_v58 = vld [vmem:[%s4331_s2 + $0x30] ss:$8 sps:$4 sm:$0xff]  }
 0x5d0   : > { %v3678_v63 = vpop.f32.mrb[33].mxu1  ;;  %3710 = vmatprep.subr.bf16.mxu0 %v4128_v18 }
 0x5d1   : > { %v1983_v0 = vpop.f32.mrb[34].mxu1  ;;  %v3932_v63 = vld [vmem:[%s4326_s13 + $0x54] ss:$8 sps:$4 sm:$0xff]  }
 0x5d2   : > { %v2076_v2 = vpack.c.bf16 %v1983_v0, %v1980_v61  ;;  %v3679_v3 = vpop.f32.mrb[35].mxu1  ;;  %v3927_v61 = vld [vmem:[%s4331_s2 + $0x40] ss:$8 sps:$4 sm:$0xff]   ;;  %v3935_v0 = vld [vmem:[%s4331_s2 + $0x54] ss:$8 sps:$4 sm:$0xff]  }
 0x5d3   : > { %3711 = vmatpush3.bf16.msra.mxu0 %v3897_v62  ;;  %v3929_v62 = vld [vmem:[%s4331_s2 + $0x44] ss:$8 sps:$4 sm:$0xff]  }
 0x5d4   : > { %3705 = vmatmul.mubr.msk.bf16.vlgmr.msra.gmra.mrb[40].mxu1 %vm1615_vm3, %v2076_v2  ;;  %2447 = vmatprep.subr.bf16.mxu0 %v3902_v16  ;;  %v3933_v2 = vld [vmem:[%s4331_s2 + $0x50] ss:$8 sps:$4 sm:$0xff]   ;;  %v3938_v3 = vld [vmem:[%s4326_s13 + $0x64] ss:$8 sps:$4 sm:$0xff]  }
 0x5d5   : > { %3717 = vmatpush3.bf16.msra.mxu1 %v3898_v1  ;;  %3720 = vmatprep.mubr.msk.bf16.mxu1 %vm4129_vm2, %v4128_v18  ;;  %v3930_v1 = vld [vmem:[%s4326_s13 + $0x50] ss:$8 sps:$4 sm:$0xff]  }
 0x5d6   : > { %3718 = vmatprep.subr.bf16.mxu1 %v4128_v18 }
 0x5d7   : > { %v2024_v5 = vpop.f32.mrb[20].mxu0 }
 0x5d8   : > { %v3684_v6 = vpop.f32.mrb[21].mxu0 }
 0x5d9   : > { %v2027_v7 = vpop.f32.mrb[22].mxu0  ;;  %3719 = vmatpush3.bf16.msra.mxu1 %v3899_v4  ;;  %v3941_v4 = vld [vmem:[%s4331_s2 + $0x64] ss:$8 sps:$4 sm:$0xff]   ;;  %v3936_v6 = vld [vmem:[%s4326_s13 + $0x60] ss:$8 sps:$4 sm:$0xff]  }
 0x5da   : > { %v2077_v8 = vpack.c.bf16 %v2027_v7, %v2024_v5  ;;  %v3685_v9 = vpop.f32.mrb[23].mxu0  ;;  %2586 = vmatprep.subr.bf16.mxu1 %v3905_v19  ;;  %v4130_v5 = vmov 0   ;;  %v3939_v7 = vld [vmem:[%s4331_s2 + $0x60] ss:$8 sps:$4 sm:$0xff]  }
 0x5db   : > { %v3947_v9 = vld [vmem:[%s4331_s2 + $0x74] ss:$8 sps:$4 sm:$0xff]  }
 0x5dc   : > { %3713 = vmatmul.mubr.msk.bf16.vlgmr.msra.gmra.mrb[28].mxu0 %vm1615_vm3, %v2077_v8  ;;  %v3944_v8 = vld [vmem:[%s4326_s13 + $0x74] ss:$8 sps:$4 sm:$0xff]  }
 0x5dd   : > { %2448 = vmatpush1.bf16.msra.mxu0 %v3900_v15  ;;  %2479 = vmatprep.mubr.bf16.mxu0 %v4130_v5 }
 0x5de   : > { %2449 = vmatprep.subr.bf16.mxu0 %v3908_v20 }
 0x5df   : > { %v2068_v11 = vpop.f32.mrb[36].mxu1 }
 0x5e0   : > { %v3690_v12 = vpop.f32.mrb[37].mxu1 }
 0x5e1   : > { %v2071_v13 = vpop.f32.mrb[38].mxu1  ;;  %2450 = vmatpush1.bf16.msra.mxu0 %v3906_v22  ;;  %v3945_v12 = vld [vmem:[%s4331_s2 + $0x70] ss:$8 sps:$4 sm:$0xff]   ;;  %v3259_v22 = vld [vmem:[%s630_s20] ss:$0 sm:$0xff] }
 0x5e2   : > { %v2078_v14 = vpack.c.bf16 %v2071_v13, %v2068_v11  ;;  %v3691_v18 = vpop.f32.mrb[39].mxu1  ;;  %2451 = vmatprep.subr.bf16.mxu0 %v3914_v24  ;;  %v3942_v11 = vld [vmem:[%s4326_s13 + $0x70] ss:$8 sps:$4 sm:$0xff]  }
 0x5e4   : > { %3721 = vmatmul.mubr.msk.bf16.vlgmr.msra.gmra.mrb[44].mxu1 %vm1615_vm3, %v2078_v14 }
 0x5e5   : > { %2587 = vmatpush1.bf16.msra.mxu1 %v3903_v17  ;;  %2452 = vmatpush1.bf16.msra.mxu0 %v3912_v26 }
 0x5e6   : > { %2588 = vmatprep.subr.bf16.mxu1 %v3911_v21  ;;  %2453 = vmatprep.subr.bf16.mxu0 %v3920_v55 }
 0x5e7   : > { %2618 = vmatprep.mubr.bf16.mxu1 %v4130_v5 }
 0x5e9   : > { %2589 = vmatpush1.bf16.msra.mxu1 %v3909_v23  ;;  %2454 = vmatpush1.bf16.msra.mxu0 %v3918_v57 }
 0x5ea   : > { %2590 = vmatprep.subr.bf16.mxu1 %v3917_v25  ;;  %2455 = vmatprep.subr.bf16.mxu0 %v3926_v60 }
 0x5ed   : > { %2591 = vmatpush1.bf16.msra.mxu1 %v3915_v27  ;;  %2456 = vmatpush1.bf16.msra.mxu0 %v3924_v59  ;;  %v3948_v27 = vld [vmem:[%s4336_s15 + $0x40] sm:$0xff]  }
 0x5ee   : > { %2592 = vmatprep.subr.bf16.mxu1 %v3923_v56  ;;  %2457 = vmatprep.subr.bf16.mxu0 %v3932_v63 }
 0x5f1   : > { %2593 = vmatpush1.bf16.msra.mxu1 %v3921_v58  ;;  %2458 = vmatpush1.bf16.msra.mxu0 %v3930_v1 }
 0x5f2   : > { %2594 = vmatprep.subr.bf16.mxu1 %v3929_v62  ;;  %2459 = vmatprep.subr.bf16.mxu0 %v3938_v3 }
 0x5f5   : > { %2595 = vmatpush1.bf16.msra.mxu1 %v3927_v61  ;;  %2460 = vmatpush1.bf16.msra.mxu0 %v3936_v6 }
 0x5f6   : > { %2596 = vmatprep.subr.bf16.mxu1 %v3935_v0  ;;  %2461 = vmatprep.subr.bf16.mxu0 %v3944_v8 }
 0x5f9   : > { %2597 = vmatpush1.bf16.msra.mxu1 %v3933_v2  ;;  %2462 = vmatpush1.bf16.msra.mxu0 %v3942_v11 }
 0x5fa   : > { %2598 = vmatprep.subr.bf16.mxu1 %v3941_v4  ;;  %3441 = vmatprep.subr.bf16.mxu0 %v3948_v27  ;;  %v4027_v27 = vld [vmem:[%s4817_s28 + $0x28] sm:$0xff] (!%p3312_p1)  }
 0x5fd   : > { %2599 = vmatpush1.bf16.msra.mxu1 %v3939_v7 }
 0x5fe   : > { %2600 = vmatprep.subr.bf16.mxu1 %v3947_v9 }
 0x601   : > { %2601 = vmatpush1.bf16.msra.mxu1 %v3945_v12 }
 0x6a1   : > { %v2144_v28 = vpop.f32.mrb[24].mxu0 }
 0x6a2   : > { %v3698_v29 = vpop.f32.mrb[25].mxu0 }
 0x6a3   : > { %v2147_v30 = vpop.f32.mrb[26].mxu0  ;;  %v3950_v29 = vld [vmem:[%s4336_s15 + $0x48] sm:$0xff]  }
 0x6a4   : > { %v3699_v31 = vpop.f32.mrb[27].mxu0 }
 0x6a5   : > { %v3952_v31 = vld [vmem:[%s4336_s15 + $0x50] sm:$0xff]  }
 0x6a7   : > { %v2200_v32 = vpop.f32.mrb[40].mxu1 }
 0x6a8   : > { %v2319_v33 = vadd.f32 %v2200_v32, %v2144_v28  ;;  %v3706_v34 = vpop.f32.mrb[41].mxu1  ;;  %v3949_v28 = vld [vmem:[%s4336_s15] sm:$0xff]   ;;  %v3953_v32 = vld [vmem:[%s4336_s15 + $0x10] sm:$0xff]  }
 0x6a9   : > { %v2203_v35 = vpop.f32.mrb[42].mxu1  ;;  %v3955_v34 = vld [vmem:[%s4336_s15 + $0x18] sm:$0xff]  }
 0x6aa   : > { %v2320_v36 = vadd.f32 %v2203_v35, %v2147_v30  ;;  %v3707_v37 = vpop.f32.mrb[43].mxu1  ;;  %v3951_v30 = vld [vmem:[%s4336_s15 + $0x8] sm:$0xff]   ;;  %v3956_v35 = vld [vmem:[%s4336_s15 + $0x60] sm:$0xff]  }
 0x6ab   : > { %v3958_v37 = vld [vmem:[%s4336_s15 + $0x68] sm:$0xff]  }
 0x6af   : > { %v2256_v38 = vpop.f32.mrb[28].mxu0 }
 0x6b0   : > { %v2321_v39 = vadd.f32 %v2319_v33, %v2256_v38  ;;  %v3714_v40 = vpop.f32.mrb[29].mxu0  ;;  %v3954_v33 = vld [vmem:[%s4336_s15 + $0x58] sm:$0xff]   ;;  %v3959_v38 = vld [vmem:[%s4336_s15 + $0x28] sm:$0xff]  }
 0x6b1   : > { %v2259_v41 = vpop.f32.mrb[30].mxu0  ;;  %v3961_v40 = vld [vmem:[%s4336_s15 + $0x30] sm:$0xff]  }
 0x6b2   : > { %v2322_v42 = vadd.f32 %v2320_v36, %v2259_v41  ;;  %v3715_v43 = vpop.f32.mrb[31].mxu0  ;;  %v3957_v36 = vld [vmem:[%s4336_s15 + $0x20] sm:$0xff]   ;;  %v3962_v41 = vld [vmem:[%s4336_s15 + $0x78] sm:$0xff]  }
 0x6b7   : > { %v2312_v44 = vpop.f32.mrb[44].mxu1 }
 0x6b8   : > { %v2323_v45 = vadd.f32 %v2321_v39, %v2312_v44  ;;  %v3722_v46 = vpop.f32.mrb[45].mxu1  ;;  %v3960_v39 = vld [vmem:[%s4336_s15 + $0x70] sm:$0xff]  }
 0x6b9   : > { %v2315_v47 = vpop.f32.mrb[46].mxu1 }
 0x6ba   : > { %v2325_v10 = vadd.f32 %v4020_v48, %v2323_v45  ;;  %v2324_v49 = vadd.f32 %v2322_v42, %v2315_v47  ;;  %v3723_v50 = vpop.f32.mrb[47].mxu1  ;;  %v3963_v42 = vld [vmem:[%s4336_s15 + $0x38] sm:$0xff]  }
 0x6bc   : > { %v2326_v52 = vadd.f32 %v4021_v51, %v2324_v49  ;;  %v2327_v53 = vmul.f32 %v2325_v10, %v2325_v10 }
 0x6be   : > { %2329 = vadd.xlane.f32.xlu0 %v2327_v53  ;;  %v2328_v54 = vmul.f32 %v2326_v52, %v2326_v52 }
 0x6c0   : > { %2331 = vadd.xlane.f32.xlu1 %v2328_v54 }
 0x74b   : > { %v2330_v13 = vpop.xlane.xlu0 %2329 }
 0x74c   : > { %v2333_v14 = vmul.f32 0.0078125, %v2330_v13 }
 0x74d   : > { %v2332_v18 = vpop.xlane.xlu1 %2331 }
 0x74e   : > { %v2335_v15 = vadd.f32 1e-06, %v2333_v14  ;;  %v2334_v16 = vmul.f32 0.0078125, %v2332_v18 }
 0x750   : > { %4000 = vrsqrt.f32 %v2335_v15  ;;  %v2336_v17 = vadd.f32 1e-06, %v2334_v16 }
 0x752   : > { %4002 = vrsqrt.f32 %v2336_v17 }
 0x75a   : > { %v4001_v19 = vpop.eup %4000 }
 0x75b   : > { %v2339_v20 = vmul.f32 %v4001_v19, %v2325_v10 }
 0x75c   : > { %v4003_v21 = vpop.eup %4002 }
 0x75d   : > { %v2340_v23 = vmul.f32 %v4003_v21, %v2326_v52  ;;  %v4644_v24 = vmul.f32 %v3259_v22, %v2339_v20  ;;  %v4022_v21 = vld [vmem:[%s4817_s28] sm:$0xff] (!%p3312_p1)  }
 0x75f   : > { %v4646_v25 = vmul.f32 %v3259_v22, %v2340_v23  ;;  %v4131_v22 = vmov (!%p3312_p1), 0.0   ;;  %v4023_v23 = vld [vmem:[%s4817_s28 + $0x8] sm:$0xff] (!%p3312_p1)  }
 0x761   : > { %v2350_v26 = vpack.c.bf16 %v4646_v25, %v4644_v24 }
 0x763   : > { %2480 = vmatmul.mubr.bf16.vlgmr.msra.gmra.mrb[32].mxu0 %v2350_v26  ;;  %2619 = vmatmul.mubr.bf16.vlgmr.msra.gmra.mrb[48].mxu1 %v2350_v26  ;;  %v4026_v26 = vld [vmem:[%s4817_s28 + $0x20] sm:$0xff] (!%p3312_p1)  }
 0x764   : > { %3442 = vmatpush3.bf16.msra.mxu0 %v3949_v28  ;;  %v4028_v28 = vld [vmem:[%s4817_s28 + $0x30] sm:$0xff] (!%p3312_p1)  }
 0x765   : > { %3443 = vmatprep.subr.bf16.mxu0 %v3950_v29  ;;  %v4029_v29 = vld [vmem:[%s4817_s28 + $0x38] sm:$0xff] (!%p3312_p1)  }
 0x768   : > { %3444 = vmatpush3.bf16.msra.mxu0 %v3951_v30 }
 0x769   : > { %3445 = vmatprep.subr.bf16.mxu0 %v3952_v31  ;;  %v3313_v31 = vld [vmem:[%s4818_s21] ss:$0 sm:$0xff] (!%p3312_p1) }
 0x76c   : > { %3446 = vmatpush3.bf16.msra.mxu0 %v3953_v32 }
 0x76d   : > { %3447 = vmatprep.subr.bf16.mxu0 %v3954_v33 }
 0x770   : > { %3448 = vmatpush3.bf16.msra.mxu0 %v3955_v34 }
 0x771   : > { %3449 = vmatprep.subr.bf16.mxu0 %v3956_v35 }
 0x774   : > { %3450 = vmatpush3.bf16.msra.mxu0 %v3957_v36 }
 0x775   : > { %3451 = vmatprep.subr.bf16.mxu0 %v3958_v37 }
 0x778   : > { %3452 = vmatpush3.bf16.msra.mxu0 %v3959_v38 }
 0x779   : > { %3453 = vmatprep.subr.bf16.mxu0 %v3960_v39 }
 0x77c   : > { %3454 = vmatpush3.bf16.msra.mxu0 %v3961_v40 }
 0x77d   : > { %3455 = vmatprep.subr.bf16.mxu0 %v3962_v41 }
 0x780   : > { %3456 = vmatpush3.bf16.msra.mxu0 %v3963_v42 }
 0x781   : > { %3724 = vmatprep.subr.bf16.mxu0 (!%p3312_p1), %v4131_v22 }
 0x836   : > { %v2481_v43 = vpop.f32.mrb[32].mxu0  ;;  %v2620_v44 = vpop.f32.mrb[48].mxu1 }
 0x837   : > { %v3292_v45 = vmul.f32 -1.442695, %v2481_v43  ;;  %v2483_v46 = vpop.f32.mrb[33].mxu0  ;;  %v2622_v47 = vpop.f32.mrb[49].mxu1 }
 0x838   : > { %v3293_v48 = vmul.f32 -1.442695, %v2483_v46  ;;  %v2485_v10 = vpop.f32.mrb[34].mxu0  ;;  %v2624_v49 = vpop.f32.mrb[50].mxu1 }
 0x839   : > { %4004 = vpow2.f32 %v3292_v45  ;;  %v3294_v50 = vmul.f32 -1.442695, %v2485_v10  ;;  %v2487_v51 = vpop.f32.mrb[35].mxu0  ;;  %v2626_v52 = vpop.f32.mrb[51].mxu1 }
 0x83a   : > { %4006 = vpow2.f32 %v3293_v48  ;;  %v3295_v53 = vmul.f32 -1.442695, %v2487_v51 }
 0x83b   : > { %4008 = vpow2.f32 %v3294_v50 }
 0x83c   : > { %4010 = vpow2.f32 %v3295_v53 }
 0x843   : > { %v4005_v54 = vpop.eup %4004 }
 0x844   : > { %v4007_v55 = vpop.eup %4006  ;;  %v2641_v56 = vadd.f32 1.0, %v4005_v54 }
 0x845   : > { %v4009_v57 = vpop.eup %4008  ;;  %v2642_v58 = vadd.f32 1.0, %v4007_v55 }
 0x846   : > { %v4011_v59 = vpop.eup %4010  ;;  %4012 = vrcp.f32 %v2641_v56  ;;  %v2643_v60 = vadd.f32 1.0, %v4009_v57 }
 0x847   : > { %4014 = vrcp.f32 %v2642_v58  ;;  %v2644_v61 = vadd.f32 1.0, %v4011_v59 }
 0x848   : > { %4016 = vrcp.f32 %v2643_v60 }
 0x849   : > { %4018 = vrcp.f32 %v2644_v61 }
 0x850   : > { %v4013_v62 = vpop.eup %4012 }
 0x851   : > { %v4015_v63 = vpop.eup %4014  ;;  %v2653_v0 = vmul.f32 %v4013_v62, %v2481_v43 }
 0x852   : > { %v4017_v1 = vpop.eup %4016  ;;  %v2654_v2 = vmul.f32 %v4015_v63, %v2483_v46 }
 0x853   : > { %v4019_v3 = vpop.eup %4018  ;;  %v2657_v4 = vmul.f32 %v2653_v0, %v2620_v44  ;;  %v2655_v5 = vmul.f32 %v4017_v1, %v2485_v10 }
 0x854   : > { %v2658_v6 = vmul.f32 %v2654_v2, %v2622_v47  ;;  %v2656_v7 = vmul.f32 %v4019_v3, %v2487_v51 }
 0x855   : > { %v2659_v8 = vmul.f32 %v2655_v5, %v2624_v49 }
 0x856   : > { %v2660_v9 = vmul.f32 %v2656_v7, %v2626_v52 }
 0x857   : > { %v2661_v11 = vpack.c.bf16 %v2659_v8, %v2657_v4 }
 0x858   : > { %v2662_v12 = vpack.c.bf16 %v2660_v9, %v2658_v6 }
 0x85a   : > { %2823 = vmatprep.mubr.bf16.mxu0 %v2662_v12 }
 0x85b   : > { %2824 = vmatmul.mubr.bf16.vlgmr.msra.gmra.mrb[36].mxu0 %v2661_v11 }
 0x85c   : > { %3725 = vmatpush3.bf16.msra.mxu0 (!%p3312_p1), %v4022_v21  ;;  %3740 = vmatprep.mubr.msk.bf16.mxu0 (!%p3312_p1), %vm4132_vm5, %v4131_v22 }
 0x85d   : > { %3726 = vmatprep.subr.bf16.mxu0 (!%p3312_p1), %v4131_v22 }
 0x860   : > { %3727 = vmatpush3.bf16.msra.mxu0 (!%p3312_p1), %v4023_v23 }
 0x861   : > { %3728 = vmatprep.subr.bf16.mxu0 (!%p3312_p1), %v4131_v22 }
 0x92e   : > { %v3457_v13 = vpop.f32.mrb[36].mxu0 }
 0x92f   : > { %v3458_v14 = vpop.f32.mrb[37].mxu0 }
 0x930   : > { %v3459_v18 = vadd.f32 %v3458_v14, %v3457_v13  ;;  %v3460_v15 = vpop.f32.mrb[38].mxu0  ;;  %2839 = sbr.rel (%p3312_p1) target bundleno = 2595 (0xa23), region = 84 }
 0x931   : > { %v3461_v16 = vpop.f32.mrb[39].mxu0 }
 0x932   : > { %v2832_v17 = vadd.f32 %v3459_v18, %v4644_v24  ;;  %v3462_v19 = vadd.f32 %v3461_v16, %v3460_v15  ;;  %v4024_v24 = vld [vmem:[%s4817_s28 + $0x10] sm:$0xff] (!%p3312_p1)  }
 0x933   : > { %3729 = vmatpush3.bf16.msra.mxu0 (!%p3312_p1), %v4024_v24 }
 0x934   : > { %2834 = vst [vmem:[#allocation2] sm:$0xff] %v2832_v17  ;;  %v2833_v20 = vadd.f32 %v3462_v19, %v4646_v25  ;;  %v4025_v25 = vld [vmem:[%s4817_s28 + $0x18] sm:$0xff] (!%p3312_p1)   ;;  %3730 = vmatprep.subr.bf16.mxu0 (!%p3312_p1), %v4131_v22 }
 0x936   : > { %2835 = vst [vmem:[#allocation2 + $0x8] sm:$0xff] %v2833_v20  ;;  %v2840_v30 = vpack.c.bf16 (!%p3312_p1), %v2833_v20, %v2832_v17 }
 0x937   : > { %3731 = vmatpush3.bf16.msra.mxu0 %v4025_v25 }
 0x938   : > { %3732 = vmatprep.subr.bf16.mxu0 %v4131_v22 }
 0x93b   : > { %3733 = vmatpush3.bf16.msra.mxu0 %v4026_v26 }
 0x93c   : > { %3734 = vmatprep.subr.bf16.mxu0 %v4131_v22 }
 0x93f   : > { %3735 = vmatpush3.bf16.msra.mxu0 %v4027_v27 }
 0x940   : > { %3736 = vmatprep.subr.bf16.mxu0 %v4131_v22 }
 0x943   : > { %3737 = vmatpush3.bf16.msra.mxu0 %v4028_v28 }
 0x944   : > { %3738 = vmatprep.subr.bf16.mxu0 %v4131_v22 }
 0x947   : > { %3739 = vmatpush3.bf16.msra.mxu0 %v4029_v29 }
 0x94a   : > { %3741 = vmatmul.mubr.bf16.vlgmr.msra.gmra.mrb[0].mxu0 %v2840_v30 }
 0xa1d   : > { %v2946_v32 = vpop.f32.mrb[0].mxu0 }
 0xa1e   : > { %v2947_v33 = vadd.f32 %v3313_v31, %v2946_v32  ;;  %v3742_v34 = vpop.f32.mrb[1].mxu0 }
 0xa1f   : > { %v2949_v35 = vpop.f32.mrb[2].mxu0 }
 0xa20   : > { %2954 = vst.msk [vmem:[%s4338_s27] sm:$0xff] %vm2953_vm6, %v2947_v33  ;;  %v2950_v36 = vadd.f32 %v3313_v31, %v2949_v35  ;;  %v3743_v37 = vpop.f32.mrb[3].mxu0 }
 0xa22   : > { %2955 = vst.msk [vmem:[%s4338_s27 + $0x8] sm:$0xff] %vm2953_vm6, %v2950_v36 }
 0xa23 PF: > { %s4819_s12 = sld [smem:[#allocation9_spill]]  ;;  %s4822_s2 = sld [smem:[#allocation24_spill]] }
 0xa24   : > { %s4820_s30 = sld [smem:[#allocation7_spill]]  ;;  %s2970_s16 = sshll.u32 %s4338_s27, 4  ;;  %s4705_s16 = int_to_ptr.vmem [resolvable:$true] %s2970_s16 }
 0xa25   : > { %s4030_s5 = scalar_lea.vmem %s4705_s16, 256  ;;  %s4133_s23 = smov [#allocation3]  }
 0xa26   : > { %p4031_p2 = scmp.ne.s32.totalorder %s4705_s16, %s4030_s5  ;;  %s4034_s22 = sshll.u32 %s4133_s23, 4  ;;  %s4035_s22 = int_to_ptr.vmem [resolvable:$false] %s4034_s22 }
 0xa27   : > { %s4036_s14 = scalar_lea.vmem %s4035_s22, 512  ;;  %p4037_p6 = scmp.lt.s32.totalorder %s4705_s16, %s4035_s22 }
 0xa28   : > { %p4032_p4 = pnand %p4031_p2, %p4260_p3  ;;  %p4038_p7 = scmp.lt.s32.totalorder %s4036_s14, %s4030_s5 }
 0xa29   : > { %s3335_s24 = sshll.u32 %s4819_s12, 8 }
 0xa2a   : > { %s4702_s15 = scalar_lea.hbm %s4822_s2, %s3335_s24  ;;  %s4823_s0 = sand.u32 1, %s4820_s30  }
 0xa2b   : > { %s4709_s4 = scalar_lea.sflag [#allocation4], %s4823_s0  ;;  %p4033_p5 = pneg %p4032_p4 }
 0xa2c   : > { %p4039_p8 = por %p4038_p7, %p4037_p6 }
 0xa2e   : > { %p4040_p10 = pnand %p4039_p8, %p4033_p5 }
 0xa30   : > { %4043 = shalt.err (!%p4040_p10)
}
 0xa31   : > { %s4044_s27 = scalar_lea.hbm %s4702_s15, 256  ;;  %s4048_s18 = scalar_lea.hbm %s4822_s2, 512 }
 0xa32   : > { %p4045_p11 = scmp.ne.s32.totalorder %s4702_s15, %s4044_s27  ;;  %p4049_p0 = scmp.lt.u32.totalorder %s4702_s15, %s4822_s2 }
 0xa33   : > { %p4050_p1 = scmp.lt.u32.totalorder %s4048_s18, %s4044_s27  ;;  %p4052_p4 = scmp.lt.u32.totalorder %s4044_s27, %s4702_s15 }
 0xa34   : > { %p4046_p12 = pnand %p4045_p11, %p4260_p3 }
 0xa35   : > { %p4051_p2 = por %p4050_p1, %p4049_p0 }
 0xa36   : > { %p4047_p13 = pneg %p4046_p12 }
 0xa37   : > { %p4053_p5 = por %p4052_p4, %p4051_p2 }
 0xa39   : > { %p4054_p6 = pnand %p4053_p5, %p4047_p13 }
 0xa3b   : > { %4057 = shalt.err (!%p4054_p6)
}
 0xa3c   : > { %s4134_s21 = smov 128   ;;  %s4135_s12 = smov 8  }
 0xa3d   : > { %3744 = dma.vmem_to_hbm [thread:$0]  (%p4260_p3), %s4705_s16, 256, %s4702_s15, %s4709_s4, %s4134_s21, %s4134_s21, %s4135_s12  }
 0xa3e PF: > { %s4824_s30 = sld [smem:[#allocation12_spill]]  ;;  %s4825_s24 = sld [smem:[#allocation6_spill]] }
 0xa44   : > { %p3750_p7 = scmp.ge.s32.totalorder %s4824_s30, 2  ;;  %s2985_s13 = sand.u32 1, %s4825_s24  }
 0xa45   : > { %s2986_s0 = scalar_lea.sflag [#allocation4], %s2985_s13 }
 0xa46   : > { %p3747_p8 = pnand %p3750_p7, %p4270_p9 }
 0xa48   : > { %4091 = dma.done.wait (!%p3747_p8), %s2986_s0, 256  }
 0xa49   : > { %4093 = vsyncadd (!%p3747_p8), %s2986_s0, 4294967040  ;;  %s27_s20 = sadd.s32 1, %s4824_s30   ;;  %s4827_s29 = sld [smem:[#allocation7_spill]] }
 0xa4a   : > { %p24_p10 = scmp.ge.s32.totalorder %s27_s20, 8   ;;  %s4828_s30 = sld [smem:[#allocation8_spill]] }
 0xa4b   : > { %s4829_s15 = sld [smem:[#allocation17_spill]]  ;;  %s4830_s16 = sld [smem:[#allocation10_spill]] }
 0xa4c   : > { %s4831_s17 = sld [smem:[#allocation11_spill]]  ;;  %s4832_s18 = sld [smem:[#allocation13_spill]] }
 0xa4d   : > { %s4833_s19 = sld [smem:[#allocation15_spill]]  ;;  %26 = sbr.rel (!%p24_p10) target bundleno = 13 (0xd), region = 146 }
 0xa54   :  { %2991 = vsyncpa [#allocation4], 1 }
 0xa55   :  { %2993 = vsyncpa [#allocation4 + $0x1], 1 }

</bundles_post_ra>
